<compile_context>
chip_gen: v7x
topology: tpu7x:2x2x1
jax: 0.10.0
libtpu: 0.0.40
codegen_flags: <defaults>
</compile_context>

<pallas_src>
import functools
import numpy as np
import jax
import jax.numpy as jnp
from jax.experimental import pallas as pl
from jax.experimental.pallas import tpu as pltpu


# ----------------------------------------------------------------------------
# Hyper-parameters (synthetic, deterministic; stand-in for `hparams`)
# ----------------------------------------------------------------------------
XYZ_DIM = 3
NUM_LEVELS = 8            # hash-grid levels
FEAT_PER_LEVEL = 2        # -> in_dim = 16
LOG2_HASHMAP = 12         # small synthetic hash table
BASE_RES = 16
DESIRED_RES = 256
PLANE_RES = 16
PLANE_FEAT = 4            # per-plane features -> plane_dim = 12
LAYER_DIM = 32
GEO_FEAT_DIM = 15
NUM_LAYERS = 2            # sigma net depth
NUM_LAYERS_COLOR = 3      # color net depth
APPEARANCE_DIM = 16
APPEARANCE_COUNT = 8
SH_DIM = 16               # sphere_harmonics, degree 4
FG_BOUND = 1.0
BG_BOUND = 2.0            # 1 + contract_bg_len (contract_bg_len = 1)
USE_SCALING = False

IN_DIM = NUM_LEVELS * FEAT_PER_LEVEL          # 16
PLANE_DIM = 3 * PLANE_FEAT                    # 12

MAX_TILE = 4096     # max points per grid step (lane dim of every kernel operand)
MIN_TILE = 512
SUBLANE_PACK = 16   # bf16 sublane-packing granularity for the channel dim
OUT_ROWS = 4        # output rows: [r, g, b, sigma]


# ----------------------------------------------------------------------------
# Pallas kernel: fused sigma MLP + trunc_exp + color MLP + sigmoid
# (points-on-lanes: every operand/intermediate is (channels, TILE) with the
#  batch on the 128-lane axis)
# ----------------------------------------------------------------------------
def nerf_mlp_kernel(slab_ref, w01_ref, wsm_ref, out_ref):
    f32, bf16 = jnp.float32, jnp.bfloat16
    slab = slab_ref[...]                                            # (C, TN) bf16

    # Fused layer 0: sigma-net L0 (output rows 0..31) and color-net L0
    # "extras" (dir/app/plane) part (output rows 32..63) share ONE pass of the
    # point slab through the MXU.
    t = jnp.dot(w01_ref[...], slab, preferred_element_type=f32)     # (64, TN)
    h = jnp.maximum(t[0:LAYER_DIM, :], 0.0).astype(bf16)            # (32, TN)

    # sigma-net L1 (rows 0..15 valid: row 0 = sigma logit, rows 1..15 = geo).
    hs = jnp.dot(wsm_ref[0:LAYER_DIM, :], h,
                 preferred_element_type=f32)                        # (32, TN)

    # trunc_exp forward is a plain exp in the reference; the clamp at 80 only
    # guards against f32 overflow (exp(80) is finite) and never triggers for
    # realistic logits.
    sigma = jnp.exp(jnp.minimum(hs[0:1, :], 80.0))                  # (1, TN)

    # Color layer 0 = extras part (already in t) + geo-feature part.  The
    # sigma-logit row of hs is masked to zero before the dot (its weight
    # column is also zero), so it can never reach the color path.
    row = jax.lax.broadcasted_iota(jnp.int32, hs.shape, 0)
    geo_in = jnp.where(row == 0, 0.0, hs).astype(bf16)              # (32, TN)
    c = t[LAYER_DIM:2 * LAYER_DIM, :] + jnp.dot(
        wsm_ref[LAYER_DIM:2 * LAYER_DIM, :], geo_in,
        preferred_element_type=f32)                                 # (32, TN)
    c = jnp.maximum(c, 0.0).astype(bf16)
    c = jnp.maximum(
        jnp.dot(wsm_ref[2 * LAYER_DIM:3 * LAYER_DIM, :], c,
                preferred_element_type=f32), 0.0).astype(bf16)
    c2 = jnp.dot(wsm_ref[3 * LAYER_DIM:4 * LAYER_DIM, :], c,
                 preferred_element_type=f32)                        # rows 0..2 valid
    color = jax.nn.sigmoid(c2[0:3, :])                              # (3, TN)

    # Lane-dense stores: both stores span the full TN lanes of the block.
    out_ref[0:3, :] = color
    out_ref[3:4, :] = sigma


def _choose_tile(n):
    """Largest tile <= MAX_TILE that still yields >= 2 grid steps (so v7x's
    two TensorCores both get work); falls back to MIN_TILE for tiny inputs."""
    tile = MAX_TILE
    while tile > MIN_TILE and (n + tile - 1) // tile < 2:
        tile //= 2
    return tile


def nerf_mlp_pallas(slab_t, w01, wsm, tile):
    """slab_t: (c_pad, n_pad) bf16 (points on lanes); w01: (64, c_pad) bf16;
    wsm: (128, 32) bf16.  Returns (4, n_pad) f32 rows [r, g, b, sigma]."""
    c_pad, n_pad = slab_t.shape
    assert n_pad % tile == 0 and tile % 128 == 0 and c_pad % 8 == 0
    return pl.pallas_call(
        nerf_mlp_kernel,
        out_shape=jax.ShapeDtypeStruct((OUT_ROWS, n_pad), jnp.float32),
        grid=(n_pad // tile,),
        in_specs=[
            # point-feature slab: lane-dense (points on lanes), one DMA / step
            pl.BlockSpec((c_pad, tile), lambda i: (0, i)),
            # fused layer-0 weight and packed small weights: same block every
            # step -> copied once (block revisiting).
            pl.BlockSpec((2 * LAYER_DIM, c_pad), lambda i: (0, 0)),
            pl.BlockSpec((4 * LAYER_DIM, LAYER_DIM), lambda i: (0, 0)),
        ],
        out_specs=pl.BlockSpec((OUT_ROWS, tile), lambda i: (0, i)),
        compiler_params=pltpu.CompilerParams(
            dimension_semantics=("parallel",)),
    )(slab_t, w01, wsm)


# ----------------------------------------------------------------------------
# Wrapper-side packing helpers
# ----------------------------------------------------------------------------
def build_slab_t(parts, tile):
    """Concat per-point feature parts -> (N, C), pad, and return the
    TRANSPOSED (c_pad, n_pad) bf16 slab (points on the lane dim)."""
    feat = jnp.concatenate(parts, axis=-1)
    n, c = feat.shape
    c_pad = SUBLANE_PACK * ((c + SUBLANE_PACK - 1) // SUBLANE_PACK)
    n_pad = tile * ((n + tile - 1) // tile)
    feat = jnp.pad(feat, ((0, n_pad - n), (0, c_pad - c)))
    return feat.T.astype(jnp.bfloat16), c_pad


def pack_weights_t(ws0, ws1, wc0, wc1, wc2, c_pad):
    """Pack the five bias-free linears, transposed for the points-on-lanes
    kernel.  All w* are in `x @ W` orientation (rows = input features); wc0
    rows are ordered [dir(16), geo_feat(15), appearance(..., plane)] to mirror
    the reference `cat([d, geo_feat, a(, plane)], -1)`.

    Returns:
      w01: (64, c_pad) bf16 — rows 0..31: sigma-L0^T (cols = slab channels
           0..k0-1); rows 32..63: color-L0^T restricted to the slab "extras"
           channels (dir/app/plane), cols k0..k0+ke-1.
      wsm: (128, 32) bf16 —
           rows   0.. 31: sigma-L1^T          (only rows 0..15 used)
           rows  32.. 63: color-L0^T geo part (column 0, the sigma channel,
                          is zero; columns >= 16 zero)
           rows  64.. 95: color-L1^T
           rows  96..127: color-L2^T          (only rows 0..2 used)
    Correctness of the zero-padding scheme relies on all unused rows/cols
    staying exactly zero (jnp.zeros init below)."""
    f32 = jnp.float32
    k0 = ws0.shape[0]
    extras = jnp.concatenate([wc0[:SH_DIM], wc0[SH_DIM + GEO_FEAT_DIM:]], axis=0)
    ke = extras.shape[0]

    w01 = jnp.zeros((2 * LAYER_DIM, c_pad), f32)
    w01 = w01.at[0:LAYER_DIM, 0:k0].set(ws0.T)
    w01 = w01.at[LAYER_DIM:, k0:k0 + ke].set(extras.T)

    wsm = jnp.zeros((4 * LAYER_DIM, LAYER_DIM), f32)
    wsm = wsm.at[0:ws1.shape[1], :].set(ws1.T)
    wsm = wsm.at[LAYER_DIM:2 * LAYER_DIM, 1:1 + GEO_FEAT_DIM].set(
        wc0[SH_DIM:SH_DIM + GEO_FEAT_DIM].T)
    wsm = wsm.at[2 * LAYER_DIM:3 * LAYER_DIM, :].set(wc1.T)
    wsm = wsm.at[3 * LAYER_DIM:3 * LAYER_DIM + wc2.shape[1], :].set(wc2.T)
    return w01.astype(jnp.bfloat16), wsm.astype(jnp.bfloat16)


# ----------------------------------------------------------------------------
# Encoders (plain-JAX glue; gather / elementwise feature assembly)
# ----------------------------------------------------------------------------
_HASH_PRIMES = jnp.array([1, 2654435761, 805459861], dtype=jnp.uint32)


def hash_encode(pos, tables, resolutions, bound):
    """Multi-resolution hash grid with trilinear interpolation. pos: (N, 3)."""
    x = jnp.clip((pos + bound) / (2.0 * bound), 0.0, 1.0)
    T = tables.shape[1]
    feats = []
    for lvl, res in enumerate(resolutions):
        xs = x * float(res)
        xi = jnp.floor(xs).astype(jnp.int32)
        xf = xs - xi.astype(jnp.float32)
        level_feat = jnp.zeros((pos.shape[0], tables.shape[2]), jnp.float32)
        for corner in range(8):
            offs = np.array([(corner >> 0) & 1, (corner >> 1) & 1, (corner >> 2) & 1],
                            dtype=np.int32)
            c = (xi + offs[None, :]).astype(jnp.uint32)
            h = (c[:, 0] * _HASH_PRIMES[0]) ^ (c[:, 1] * _HASH_PRIMES[1]) \
                ^ (c[:, 2] * _HASH_PRIMES[2])
            idx = (h % jnp.uint32(T)).astype(jnp.int32)
            w = jnp.prod(jnp.where(offs[None, :] == 1, xf, 1.0 - xf),
                         axis=-1, keepdims=True)
            level_feat = level_feat + w * tables[lvl][idx]
        feats.append(level_feat)
    return jnp.concatenate(feats, axis=-1)


def plane_encode(pos, planes, bound):
    """Tri-plane encoder: 3 x (R, R, F) grids, bilinear interpolation, concat."""
    x = jnp.clip((pos + bound) / (2.0 * bound), 0.0, 1.0)
    R = planes.shape[1]
    feats = []
    for p, (a, b) in enumerate(((0, 1), (0, 2), (1, 2))):
        u = x[:, a] * (R - 1)
        v = x[:, b] * (R - 1)
        u0 = jnp.clip(jnp.floor(u).astype(jnp.int32), 0, R - 2)
        v0 = jnp.clip(jnp.floor(v).astype(jnp.int32), 0, R - 2)
        du = (u - u0.astype(jnp.float32))[:, None]
        dv = (v - v0.astype(jnp.float32))[:, None]
        g = planes[p]
        f00 = g[u0, v0]
        f01 = g[u0, v0 + 1]
        f10 = g[u0 + 1, v0]
        f11 = g[u0 + 1, v0 + 1]
        feats.append(f00 * (1 - du) * (1 - dv) + f01 * (1 - du) * dv
                     + f10 * du * (1 - dv) + f11 * du * dv)
    return jnp.concatenate(feats, axis=-1)


def sh_encode(d):
    """Degree-4 spherical harmonics (16 components)."""
    x, y, z = d[:, 0], d[:, 1], d[:, 2]
    xx, yy, zz = x * x, y * y, z * z
    xy, yz, xz = x * y, y * z, x * z
    comps = [
        jnp.full_like(x, 0.28209479177387814),
        -0.48860251190291987 * y,
        0.48860251190291987 * z,
        -0.48860251190291987 * x,
        1.0925484305920792 * xy,
        -1.0925484305920792 * yz,
        0.94617469575755997 * zz - 0.31539156525251999,
        -1.0925484305920792 * xz,
        0.54627421529603959 * xx - 0.54627421529603959 * yy,
        0.59004358992664352 * y * (-3.0 * xx + yy),
        2.8906114426405538 * xy * z,
        0.45704579946446572 * y * (1.0 - 5.0 * zz),
        0.3731763325901154 * z * (5.0 * zz - 3.0),
        0.45704579946446572 * x * (1.0 - 5.0 * zz),
        1.4453057213202769 * z * (xx - yy),
        0.59004358992664352 * x * (-xx + 3.0 * yy),
    ]
    return jnp.stack(comps, axis=-1)


# ----------------------------------------------------------------------------
# Parameter construction (deterministic, synthetic)
# ----------------------------------------------------------------------------
def make_params(key):
    ks = iter(jax.random.split(key, 32))

    def lin(k, fan_in, fan_out):
        return (jax.random.normal(k, (fan_in, fan_out), jnp.float32)
                / np.sqrt(fan_in)).astype(jnp.float32)

    b = np.exp((np.log(DESIRED_RES) - np.log(BASE_RES)) / max(NUM_LEVELS - 1, 1))
    resolutions = [int(np.floor(BASE_RES * (b ** l))) for l in range(NUM_LEVELS)]
    T = 1 << LOG2_HASHMAP

    def hash_tables(k):
        return jax.random.uniform(k, (NUM_LEVELS, T, FEAT_PER_LEVEL),
                                  jnp.float32, -1e-4, 1e-4)

    params = {
        "resolutions": resolutions,
        "emb_a": jax.random.normal(next(ks), (APPEARANCE_COUNT, APPEARANCE_DIM),
                                   jnp.float32),
        # foreground
        "hash_fg": hash_tables(next(ks)),
        "planes": jax.random.uniform(next(ks), (3, PLANE_RES, PLANE_RES, PLANE_FEAT),
                                     jnp.float32, -1e-2, 1e-2),
        "fg_ws0": lin(next(ks), IN_DIM + PLANE_DIM, LAYER_DIM),
        "fg_ws1": lin(next(ks), LAYER_DIM, 1 + GEO_FEAT_DIM),
        "fg_wc0": lin(next(ks), SH_DIM + GEO_FEAT_DIM + APPEARANCE_DIM + PLANE_DIM,
                      LAYER_DIM),
        "fg_wc1": lin(next(ks), LAYER_DIM, LAYER_DIM),
        "fg_wc2": lin(next(ks), LAYER_DIM, 3),
        # background  (TODO(synk): bg hash uses the same small synthetic table
        # size instead of log2_hashmap_size=19 from the reference hparams)
        "hash_bg": hash_tables(next(ks)),
        "bg_ws0": lin(next(ks), IN_DIM, LAYER_DIM),
        "bg_ws1": lin(next(ks), LAYER_DIM, 1 + GEO_FEAT_DIM),
        "bg_wc0": lin(next(ks), SH_DIM + GEO_FEAT_DIM + APPEARANCE_DIM, LAYER_DIM),
        "bg_wc1": lin(next(ks), LAYER_DIM, LAYER_DIM),
        "bg_wc2": lin(next(ks), LAYER_DIM, 3),
    }
    return params


# ----------------------------------------------------------------------------
# Forward passes (mirror NeRF.forward / forward_fg / forward_bg)
# ----------------------------------------------------------------------------
def forward_fg(params, x):
    n = x.shape[0]
    tile = _choose_tile(n)
    position = x[:, :XYZ_DIM]
    h = hash_encode(position, params["hash_fg"], params["resolutions"], FG_BOUND)
    # TODO(synk): use_scaling position rescale skipped (USE_SCALING=False in hparams).
    plane_feat = plane_encode(position, params["planes"], FG_BOUND)
    d = sh_encode(x[:, XYZ_DIM:-1])
    a = params["emb_a"][x[:, -1].astype(jnp.int32)]

    # Slab channels: [hash(16) | plane(12) | dir(16) | app(16) | plane(12) | pad]
    slab_t, c_pad = build_slab_t([h, plane_feat, d, a, plane_feat], tile)
    w01, wsm = pack_weights_t(params["fg_ws0"], params["fg_ws1"], params["fg_wc0"],
                              params["fg_wc1"], params["fg_wc2"], c_pad)
    out = nerf_mlp_pallas(slab_t, w01, wsm, tile)     # (4, n_pad)
    return out[:, :n].T                               # (n, 4) = [color, sigma]


def forward_bg(params, x):
    n = x.shape[0]
    tile = _choose_tile(n)
    position = x[:, :XYZ_DIM]
    h = hash_encode(position, params["hash_bg"], params["resolutions"], BG_BOUND)
    d = sh_encode(x[:, XYZ_DIM:-1])
    a = params["emb_a"][x[:, -1].astype(jnp.int32)]

    # Slab channels: [hash(16) | dir(16) | app(16) | pad]
    slab_t, c_pad = build_slab_t([h, d, a], tile)
    w01, wsm = pack_weights_t(params["bg_ws0"], params["bg_ws1"], params["bg_wc0"],
                              params["bg_wc1"], params["bg_wc2"], c_pad)
    out = nerf_mlp_pallas(slab_t, w01, wsm, tile)
    return out[:, :n].T


def nerf_forward(params, point_type, x):
    if point_type == "fg":
        return forward_fg(params, x)
    elif point_type == "bg":
        return forward_bg(params, x)
    raise NotImplementedError("Unknown point type")


def forward_reference(params, point_type, x):
    """Pure-JAX f32 reference mirroring NeRF.forward_{fg,bg} (for testing)."""
    position = x[:, :XYZ_DIM]
    d = sh_encode(x[:, XYZ_DIM:-1])
    a = params["emb_a"][x[:, -1].astype(jnp.int32)]
    if point_type == "fg":
        h0 = hash_encode(position, params["hash_fg"], params["resolutions"], FG_BOUND)
        plane_feat = plane_encode(position, params["planes"], FG_BOUND)
        h0 = jnp.concatenate([h0, plane_feat], -1)
        ws0, ws1 = params["fg_ws0"], params["fg_ws1"]
        wc0, wc1, wc2 = params["fg_wc0"], params["fg_wc1"], params["fg_wc2"]
        extra = [plane_feat]
    else:
        h0 = hash_encode(position, params["hash_bg"], params["resolutions"], BG_BOUND)
        ws0, ws1 = params["bg_ws0"], params["bg_ws1"]
        wc0, wc1, wc2 = params["bg_wc0"], params["bg_wc1"], params["bg_wc2"]
        extra = []
    hs = jnp.maximum(h0 @ ws0, 0.0) @ ws1
    sigma = jnp.exp(hs[:, 0:1])
    geo = hs[:, 1:]
    c = jnp.concatenate([d, geo, a] + extra, -1)
    c = jnp.maximum(c @ wc0, 0.0)
    c = jnp.maximum(c @ wc1, 0.0)
    color = jax.nn.sigmoid(c @ wc2)
    return jnp.concatenate([color, sigma], -1)


# ----------------------------------------------------------------------------
# Main
# ----------------------------------------------------------------------------
if __name__ == "__main__":
    key = jax.random.PRNGKey(0)
    kp, kx, kd, ka = jax.random.split(key, 4)

    params = make_params(kp)

    N = 2000  # not a multiple of the tile -> exercises wrapper-side padding
    pos = jax.random.uniform(kx, (N, 3), jnp.float32, -0.9, 0.9)
    dirs = jax.random.normal(kd, (N, 3), jnp.float32)
    dirs = dirs / jnp.linalg.norm(dirs, axis=-1, keepdims=True)
    app_idx = jax.random.randint(ka, (N, 1), 0, APPEARANCE_COUNT).astype(jnp.float32)
    # x = [position(3), direction(3), appearance_index(1)]  -> (N, 7)
    x = jnp.concatenate([pos, dirs, app_idx], axis=-1)

    out_fg = jax.jit(functools.partial(nerf_forward, params, "fg"))(x)
    out_bg = jax.jit(functools.partial(nerf_forward, params, "bg"))(x)
    jax.block_until_ready((out_fg, out_bg))

    assert out_fg.shape == (N, 4) and out_bg.shape == (N, 4)
    assert bool(jnp.all(jnp.isfinite(out_fg))) and bool(jnp.all(jnp.isfinite(out_bg)))
    # color channels are sigmoid outputs, sigma is exp output (positive)
    assert bool(jnp.all(out_fg[:, :3] >= 0) & jnp.all(out_fg[:, :3] <= 1))
    assert bool(jnp.all(out_fg[:, 3] > 0))
    assert bool(jnp.all(out_bg[:, :3] >= 0) & jnp.all(out_bg[:, :3] <= 1))
    assert bool(jnp.all(out_bg[:, 3] > 0))

    # Pure-JAX f32 reference check (kernel computes in bf16 -> loose tolerances).
    for pt, out in (("fg", out_fg), ("bg", out_bg)):
        ref = forward_reference(params, pt, x)
        color_err = float(jnp.max(jnp.abs(out[:, :3] - ref[:, :3])))
        sigma_err = float(jnp.max(jnp.abs(out[:, 3] - ref[:, 3]) / (ref[:, 3] + 1e-6)))
        assert color_err < 0.08, (pt, color_err)
        assert sigma_err < 0.08, (pt, sigma_err)

    print("KERNEL_OK")
</pallas_src>

<mosaic_0001>
module attributes {stable_mosaic.version = 11 : i64} {
  func.func private @main(%arg0: i32) attributes {dimension_semantics = [#tpu.dimension_semantics<core_parallel>], iteration_bounds = array<i64: 2>, tpu.core_type = #tpu.core_type<sc_scalar_subcore>, window_params = []} {
    return
  }
}

module attributes {stable_mosaic.version = 11 : i64} {
  func.func private @main(%arg0: i32) attributes {dimension_semantics = [#tpu.dimension_semantics<core_parallel>], iteration_bounds = array<i64: 2>, tpu.core_type = #tpu.core_type<sc_scalar_subcore>, window_params = []} {
    return
  }
}

module attributes {stable_mosaic.version = 11 : i64} {
  func.func @nerf_mlp_kernel(%arg0: i32, %arg1: memref<80x1024xbf16, #tpu.memory_space<vmem>>, %arg2: memref<64x80xbf16, #tpu.memory_space<vmem>>, %arg3: memref<128x32xbf16, #tpu.memory_space<vmem>>, %arg4: memref<4x1024xf32, #tpu.memory_space<vmem>>) attributes {dimension_semantics = [#tpu.dimension_semantics<parallel>], iteration_bounds = array<i64: 2>, scalar_prefetch = 0 : i64, scratch_operands = 0 : i64, tpu.core_type = #tpu.core_type<tc>, window_params = [{transform_indices = @transform_0, window_bounds = array<i64: 80, 1024>}, {pipeline_mode = #tpu.pipeline_mode<synchronous>, transform_indices = @transform_1, window_bounds = array<i64: 64, 80>}, {pipeline_mode = #tpu.pipeline_mode<synchronous>, transform_indices = @transform_2, window_bounds = array<i64: 128, 32>}, {transform_indices = @transform_3, window_bounds = array<i64: 4, 1024>}]} {
    %c0 = arith.constant 0 : index
    %c0_0 = arith.constant 0 : index
    %0 = vector.load %arg1[%c0, %c0_0] : memref<80x1024xbf16, #tpu.memory_space<vmem>>, vector<80x1024xbf16>
    %c0_1 = arith.constant 0 : index
    %c0_2 = arith.constant 0 : index
    %1 = vector.load %arg2[%c0_1, %c0_2] : memref<64x80xbf16, #tpu.memory_space<vmem>>, vector<64x80xbf16>
    %cst = arith.constant dense<0.000000e+00> : vector<64x1024xf32>
    %2 = tpu.matmul %1, %0, %cst {dimension_numbers = #tpu.dot_dimension_numbers<[1], [0], [0], [1], [0, 0, 1, 1], [], []>} : vector<64x80xbf16>, vector<80x1024xbf16>, vector<64x1024xf32> -> vector<64x1024xf32>
    %3 = vector.extract_strided_slice %2 {offsets = [0, 0], sizes = [32, 1024], strides = [1, 1]} : vector<64x1024xf32> to vector<32x1024xf32>
    %cst_3 = arith.constant 0.000000e+00 : f32
    %4 = vector.broadcast %cst_3 : f32 to vector<32x1024xf32>
    %5 = arith.maximumf %3, %4 : vector<32x1024xf32>
    %6 = arith.truncf %5 : vector<32x1024xf32> to vector<32x1024xbf16>
    %c0_4 = arith.constant 0 : index
    %c0_5 = arith.constant 0 : index
    %7 = vector.load %arg3[%c0_4, %c0_5] : memref<128x32xbf16, #tpu.memory_space<vmem>>, vector<32x32xbf16>
    %cst_6 = arith.constant dense<0.000000e+00> : vector<32x1024xf32>
    %8 = tpu.matmul %7, %6, %cst_6 {dimension_numbers = #tpu.dot_dimension_numbers<[1], [0], [0], [1], [0, 0, 1, 1], [], []>} : vector<32x32xbf16>, vector<32x1024xbf16>, vector<32x1024xf32> -> vector<32x1024xf32>
    %9 = vector.extract_strided_slice %8 {offsets = [0, 0], sizes = [1, 1024], strides = [1, 1]} : vector<32x1024xf32> to vector<1x1024xf32>
    %cst_7 = arith.constant 8.000000e+01 : f32
    %10 = vector.broadcast %cst_7 : f32 to vector<1x1024xf32>
    %11 = arith.minimumf %9, %10 : vector<1x1024xf32>
    %12 = math.exp %11 : vector<1x1024xf32>
    %13 = tpu.iota {dimensions = array<i32: 0>} : vector<32x1024xi32>
    %c0_i32 = arith.constant 0 : i32
    %14 = vector.broadcast %c0_i32 : i32 to vector<32x1024xi32>
    %15 = arith.cmpi eq, %13, %14 : vector<32x1024xi32>
    %cst_8 = arith.constant 0.000000e+00 : f32
    %16 = vector.broadcast %cst_8 : f32 to vector<32x1024xf32>
    %17 = arith.select %15, %16, %8 : vector<32x1024xi1>, vector<32x1024xf32>
    %18 = arith.truncf %17 : vector<32x1024xf32> to vector<32x1024xbf16>
    %19 = vector.extract_strided_slice %2 {offsets = [32, 0], sizes = [32, 1024], strides = [1, 1]} : vector<64x1024xf32> to vector<32x1024xf32>
    %c32 = arith.constant 32 : index
    %c0_9 = arith.constant 0 : index
    %20 = vector.load %arg3[%c32, %c0_9] : memref<128x32xbf16, #tpu.memory_space<vmem>>, vector<32x32xbf16>
    %cst_10 = arith.constant dense<0.000000e+00> : vector<32x1024xf32>
    %21 = tpu.matmul %20, %18, %cst_10 {dimension_numbers = #tpu.dot_dimension_numbers<[1], [0], [0], [1], [0, 0, 1, 1], [], []>} : vector<32x32xbf16>, vector<32x1024xbf16>, vector<32x1024xf32> -> vector<32x1024xf32>
    %22 = arith.addf %19, %21 : vector<32x1024xf32>
    %cst_11 = arith.constant 0.000000e+00 : f32
    %23 = vector.broadcast %cst_11 : f32 to vector<32x1024xf32>
    %24 = arith.maximumf %22, %23 : vector<32x1024xf32>
    %25 = arith.truncf %24 : vector<32x1024xf32> to vector<32x1024xbf16>
    %c64 = arith.constant 64 : index
    %c0_12 = arith.constant 0 : index
    %26 = vector.load %arg3[%c64, %c0_12] : memref<128x32xbf16, #tpu.memory_space<vmem>>, vector<32x32xbf16>
    %cst_13 = arith.constant dense<0.000000e+00> : vector<32x1024xf32>
    %27 = tpu.matmul %26, %25, %cst_13 {dimension_numbers = #tpu.dot_dimension_numbers<[1], [0], [0], [1], [0, 0, 1, 1], [], []>} : vector<32x32xbf16>, vector<32x1024xbf16>, vector<32x1024xf32> -> vector<32x1024xf32>
    %cst_14 = arith.constant 0.000000e+00 : f32
    %28 = vector.broadcast %cst_14 : f32 to vector<32x1024xf32>
    %29 = arith.maximumf %27, %28 : vector<32x1024xf32>
    %30 = arith.truncf %29 : vector<32x1024xf32> to vector<32x1024xbf16>
    %c96 = arith.constant 96 : index
    %c0_15 = arith.constant 0 : index
    %31 = vector.load %arg3[%c96, %c0_15] : memref<128x32xbf16, #tpu.memory_space<vmem>>, vector<32x32xbf16>
    %cst_16 = arith.constant dense<0.000000e+00> : vector<32x1024xf32>
    %32 = tpu.matmul %31, %30, %cst_16 {dimension_numbers = #tpu.dot_dimension_numbers<[1], [0], [0], [1], [0, 0, 1, 1], [], []>} : vector<32x32xbf16>, vector<32x1024xbf16>, vector<32x1024xf32> -> vector<32x1024xf32>
    %33 = vector.extract_strided_slice %32 {offsets = [0, 0], sizes = [3, 1024], strides = [1, 1]} : vector<32x1024xf32> to vector<3x1024xf32>
    %34 = arith.negf %33 : vector<3x1024xf32>
    %35 = math.exp %34 : vector<3x1024xf32>
    %cst_17 = arith.constant 1.000000e+00 : f32
    %36 = vector.broadcast %cst_17 : f32 to vector<3x1024xf32>
    %37 = arith.addf %36, %35 : vector<3x1024xf32>
    %38 = arith.divf %36, %37 : vector<3x1024xf32>
    %c0_18 = arith.constant 0 : index
    %c0_19 = arith.constant 0 : index
    %39 = vector.load %arg4[%c0_18, %c0_19] : memref<4x1024xf32, #tpu.memory_space<vmem>>, vector<3x1024xf32>
    tpu.vector_store %arg4[%c0_18, %c0_19], %38 {strides = array<i32>} : memref<4x1024xf32, #tpu.memory_space<vmem>>, vector<3x1024xf32>,
    %c3 = arith.constant 3 : index
    %c0_20 = arith.constant 0 : index
    %40 = vector.load %arg4[%c3, %c0_20] : memref<4x1024xf32, #tpu.memory_space<vmem>>, vector<1x1024xf32>
    tpu.vector_store %arg4[%c3, %c0_20], %12 {strides = array<i32>} : memref<4x1024xf32, #tpu.memory_space<vmem>>, vector<1x1024xf32>,
    return
  }
  func.func @transform_0(%arg0: i32) -> (i32, i32) {
    %c0_i32 = arith.constant 0 : i32
    %c0_i32_0 = arith.constant 0 : i32
    return %c0_i32, %arg0 : i32, i32
  }
  func.func @transform_1(%arg0: i32) -> (i32, i32) {
    %c0_i32 = arith.constant 0 : i32
    %c0_i32_0 = arith.constant 0 : i32
    %c0_i32_1 = arith.constant 0 : i32
    return %c0_i32, %c0_i32_0 : i32, i32
  }
  func.func @transform_2(%arg0: i32) -> (i32, i32) {
    %c0_i32 = arith.constant 0 : i32
    %c0_i32_0 = arith.constant 0 : i32
    %c0_i32_1 = arith.constant 0 : i32
    return %c0_i32, %c0_i32_0 : i32, i32
  }
  func.func @transform_3(%arg0: i32) -> (i32, i32) {
    %c0_i32 = arith.constant 0 : i32
    %c0_i32_0 = arith.constant 0 : i32
    return %c0_i32, %arg0 : i32, i32
  }
}

</mosaic_0001>

<bundles_post_ra>
// kernel: nerf_forward.1
= control target key start
LH: loop header
LB: loop body
LE: loop exit
PB: predicated region body
PF: predicated region fallthrough
CT: control target
= control target key end

     0   :  { %s2519_s12 = smov 0   ;;  %s2521_s13 = smov 0   ;;  %s2897_s0 = inlined_call_operand.vmem [shape: bf16[80,2048], index: 0, kind: input, shape index: {}]   ;;  %s2898_s1 = inlined_call_operand.vmem [shape: bf16[64,80], index: 1, kind: input, shape index: {}]   ;;  %s2899_s2 = inlined_call_operand.vmem [shape: bf16[128,32], index: 2, kind: input, shape index: {}]   ;;  %s2900_s3 = inlined_call_operand.vmem [shape: f32[4,2048], index: 3, kind: output, shape index: {}]  }
   0x1   :  { %s2523_s14 = smov 0  }
   0x2 LB: > { %s2197_s15 = sadd.s32 4294967295, %s2494_s14   ;;  %s2536_s16 = sadd.s32 1, %s2494_s14   ;;  %s2494_s14 = sphi %s2523_s14, %s2905_s14   ;;  %s2490_s13 = sphi %s2521_s13, %s2904_s13   ;;  %s2486_s12 = sphi %s2519_s12, %s2903_s12  }
   0x3   : > { %s17_s17 = ssub.s32 %s2494_s14, %s2536_s16  ;;  %s20_s18 = sadd.s32 1, %s2490_s13 }
   0x4   : > { %p18_p0 = scmp.eq.s32.totalorder %s17_s17, 0  ;;  %p27_p1 = scmp.ne.s32.totalorder %s2490_s13, %s2486_s12 }
   0x5   : > { %p28_p2 = scmp.eq.s32.totalorder %s2494_s14, 0  ;;  %p2200_p4 = scmp.ge.s32.totalorder %s2494_s14, 2 }
   0x6   : > { %s2545_s19 = scalar_select %p18_p0, %s2490_s13, %s20_s18  }
   0x7   : > { %p29_p3 = por %p28_p2, %p27_p1  ;;  %127 = sbr.rel (%p2200_p4) target bundleno = 39 (0x27), region = 24 }
   0xe   : > { %130 = sbr.rel (!%p29_p3) target bundleno = 39 (0x27), region = 28  ;;  %s132_s20 = sand.u32 (%p29_p3), 1, %s2490_s13  }
   0xf   : > { %s2349_s21 = sshll.u32 (%p29_p3), %s2494_s14, 5  ;;  %s2383_s22 = smul.u32 (%p29_p3), 320, %s132_s20 }
  0x10   : > { %s2553_s25 = scalar_lea.vmem (%p29_p3), %s2897_s0, %s2349_s21 }
  0x11   : > { %v150_v0 = vld [vmem:[%s2553_s25] sm:$0xff] (%p29_p3)  ;;  %v152_v1 = vld [vmem:[%s2553_s25 + $0x8] sm:$0xff] (%p29_p3)  ;;  %v154_v2 = vld [vmem:[%s2553_s25 + $0x10] sm:$0xff] (%p29_p3)  ;;  %s2561_s26 = scalar_lea.vmem (%p29_p3), [#allocation2], %s2383_s22 }
  0x12   : > { %v156_v3 = vld [vmem:[%s2553_s25 + $0x18] sm:$0xff] (%p29_p3)  ;;  %v158_v4 = vld [vmem:[%s2553_s25 + $0x40] sm:$0xff] (%p29_p3)  ;;  %v160_v5 = vld [vmem:[%s2553_s25 + $0x48] sm:$0xff] (%p29_p3)  ;;  %151 = vst [vmem:[%s2561_s26] sm:$0xff] (%p29_p3), %v150_v0 }
  0x13   : > { %153 = vst [vmem:[%s2561_s26 + $0x8] sm:$0xff] (%p29_p3), %v152_v1  ;;  %155 = vst [vmem:[%s2561_s26 + $0x10] sm:$0xff] (%p29_p3), %v154_v2  ;;  %v162_v6 = vld [vmem:[%s2553_s25 + $0x50] sm:$0xff] (%p29_p3)  ;;  %v164_v7 = vld [vmem:[%s2553_s25 + $0x58] sm:$0xff] (%p29_p3) }
  0x14   : > { %157 = vst [vmem:[%s2561_s26 + $0x18] sm:$0xff] (%p29_p3), %v156_v3  ;;  %159 = vst [vmem:[%s2561_s26 + $0x20] sm:$0xff] (%p29_p3), %v158_v4  ;;  %v166_v8 = vld [vmem:[%s2553_s25 + $0x80] sm:$0xff] (%p29_p3)  ;;  %v168_v9 = vld [vmem:[%s2553_s25 + $0x88] sm:$0xff] (%p29_p3) }
  0x15   : > { %161 = vst [vmem:[%s2561_s26 + $0x28] sm:$0xff] %v160_v5  ;;  %163 = vst [vmem:[%s2561_s26 + $0x30] sm:$0xff] %v162_v6  ;;  %v170_v10 = vld [vmem:[%s2553_s25 + $0x90] sm:$0xff]  ;;  %v172_v11 = vld [vmem:[%s2553_s25 + $0x98] sm:$0xff] }
  0x16   : > { %165 = vst [vmem:[%s2561_s26 + $0x38] sm:$0xff] %v164_v7  ;;  %167 = vst [vmem:[%s2561_s26 + $0x40] sm:$0xff] %v166_v8  ;;  %v174_v12 = vld [vmem:[%s2553_s25 + $0xc0] sm:$0xff]  ;;  %v176_v13 = vld [vmem:[%s2553_s25 + $0xc8] sm:$0xff] }
  0x17   : > { %169 = vst [vmem:[%s2561_s26 + $0x48] sm:$0xff] %v168_v9  ;;  %171 = vst [vmem:[%s2561_s26 + $0x50] sm:$0xff] %v170_v10  ;;  %v178_v14 = vld [vmem:[%s2553_s25 + $0xd0] sm:$0xff]  ;;  %v180_v15 = vld [vmem:[%s2553_s25 + $0xd8] sm:$0xff] }
  0x18   : > { %173 = vst [vmem:[%s2561_s26 + $0x58] sm:$0xff] %v172_v11  ;;  %175 = vst [vmem:[%s2561_s26 + $0x60] sm:$0xff] %v174_v12  ;;  %v182_v16 = vld [vmem:[%s2553_s25 + $0x100] sm:$0xff]  ;;  %v184_v17 = vld [vmem:[%s2553_s25 + $0x108] sm:$0xff] }
  0x19   : > { %177 = vst [vmem:[%s2561_s26 + $0x68] sm:$0xff] %v176_v13  ;;  %179 = vst [vmem:[%s2561_s26 + $0x70] sm:$0xff] %v178_v14  ;;  %v186_v18 = vld [vmem:[%s2553_s25 + $0x110] sm:$0xff]  ;;  %v188_v19 = vld [vmem:[%s2553_s25 + $0x118] sm:$0xff] }
  0x1a   : > { %181 = vst [vmem:[%s2561_s26 + $0x78] sm:$0xff] %v180_v15  ;;  %183 = vst [vmem:[%s2561_s26 + $0x80] sm:$0xff] %v182_v16  ;;  %v190_v20 = vld [vmem:[%s2553_s25 + $0x140] sm:$0xff]  ;;  %v192_v21 = vld [vmem:[%s2553_s25 + $0x148] sm:$0xff] }
  0x1b   : > { %185 = vst [vmem:[%s2561_s26 + $0x88] sm:$0xff] %v184_v17  ;;  %187 = vst [vmem:[%s2561_s26 + $0x90] sm:$0xff] %v186_v18  ;;  %v194_v22 = vld [vmem:[%s2553_s25 + $0x150] sm:$0xff]  ;;  %v196_v23 = vld [vmem:[%s2553_s25 + $0x158] sm:$0xff] }
  0x1c   : > { %189 = vst [vmem:[%s2561_s26 + $0x98] sm:$0xff] %v188_v19  ;;  %191 = vst [vmem:[%s2561_s26 + $0xa0] sm:$0xff] %v190_v20  ;;  %v198_v24 = vld [vmem:[%s2553_s25 + $0x180] sm:$0xff]  ;;  %v200_v25 = vld [vmem:[%s2553_s25 + $0x188] sm:$0xff] }
  0x1d   : > { %193 = vst [vmem:[%s2561_s26 + $0xa8] sm:$0xff] %v192_v21  ;;  %195 = vst [vmem:[%s2561_s26 + $0xb0] sm:$0xff] %v194_v22  ;;  %v202_v26 = vld [vmem:[%s2553_s25 + $0x190] sm:$0xff]  ;;  %v204_v27 = vld [vmem:[%s2553_s25 + $0x198] sm:$0xff] }
  0x1e   : > { %197 = vst [vmem:[%s2561_s26 + $0xb8] sm:$0xff] %v196_v23  ;;  %199 = vst [vmem:[%s2561_s26 + $0xc0] sm:$0xff] %v198_v24  ;;  %v206_v28 = vld [vmem:[%s2553_s25 + $0x1c0] sm:$0xff]  ;;  %v208_v29 = vld [vmem:[%s2553_s25 + $0x1c8] sm:$0xff] }
  0x1f   : > { %201 = vst [vmem:[%s2561_s26 + $0xc8] sm:$0xff] %v200_v25  ;;  %203 = vst [vmem:[%s2561_s26 + $0xd0] sm:$0xff] %v202_v26  ;;  %v210_v30 = vld [vmem:[%s2553_s25 + $0x1d0] sm:$0xff]  ;;  %v212_v31 = vld [vmem:[%s2553_s25 + $0x1d8] sm:$0xff] }
  0x20   : > { %205 = vst [vmem:[%s2561_s26 + $0xd8] sm:$0xff] %v204_v27  ;;  %207 = vst [vmem:[%s2561_s26 + $0xe0] sm:$0xff] %v206_v28  ;;  %v214_v32 = vld [vmem:[%s2553_s25 + $0x200] sm:$0xff]  ;;  %v216_v33 = vld [vmem:[%s2553_s25 + $0x208] sm:$0xff] }
  0x21   : > { %209 = vst [vmem:[%s2561_s26 + $0xe8] sm:$0xff] %v208_v29  ;;  %211 = vst [vmem:[%s2561_s26 + $0xf0] sm:$0xff] %v210_v30  ;;  %v218_v34 = vld [vmem:[%s2553_s25 + $0x210] sm:$0xff]  ;;  %v220_v35 = vld [vmem:[%s2553_s25 + $0x218] sm:$0xff] }
  0x22   : > { %213 = vst [vmem:[%s2561_s26 + $0xf8] sm:$0xff] %v212_v31  ;;  %215 = vst [vmem:[%s2561_s26 + $0x100] sm:$0xff] %v214_v32  ;;  %v222_v36 = vld [vmem:[%s2553_s25 + $0x240] sm:$0xff]  ;;  %v224_v37 = vld [vmem:[%s2553_s25 + $0x248] sm:$0xff] }
  0x23   : > { %217 = vst [vmem:[%s2561_s26 + $0x108] sm:$0xff] %v216_v33  ;;  %219 = vst [vmem:[%s2561_s26 + $0x110] sm:$0xff] %v218_v34  ;;  %v226_v38 = vld [vmem:[%s2553_s25 + $0x250] sm:$0xff]  ;;  %v228_v39 = vld [vmem:[%s2553_s25 + $0x258] sm:$0xff] }
  0x24   : > { %221 = vst [vmem:[%s2561_s26 + $0x118] sm:$0xff] %v220_v35  ;;  %223 = vst [vmem:[%s2561_s26 + $0x120] sm:$0xff] %v222_v36 }
  0x25   : > { %225 = vst [vmem:[%s2561_s26 + $0x128] sm:$0xff] %v224_v37  ;;  %227 = vst [vmem:[%s2561_s26 + $0x130] sm:$0xff] %v226_v38 }
  0x26   : > { %229 = vst [vmem:[%s2561_s26 + $0x138] sm:$0xff] %v228_v39 }
  0x27 PF: > { %p2203_p5 = scmp.ge.s32.totalorder %s2494_s14, 1  ;;  %p234_p6 = scmp.lt.s32.totalorder %s2494_s14, 3 }
  0x29   : > { %p235_p7 = pnand %p2203_p5, %p234_p6 }
  0x2a   : > { %s241_s27 = sand.u32 (!%p235_p7), 1, %s2486_s12   ;;  %v2496_v40 = vmov (!%p235_p7), 0   ;;  %v2671_v23 = vld [vmem:[%s2898_s1] sm:$0xff] (!%p235_p7)   ;;  %vm540_vm0 = vcmask (!%p235_p7), 654336   ;;  %vm907_vm1 = vcmask (!%p235_p7), 261120   ;;  %vm2497_vm3 = vmmov (!%p235_p7), 1  }
  0x2b   : > { %238 = sbr.rel (%p235_p7) target bundleno = 1269 (0x4f5), region = 51  ;;  %585 = vmatprep.mubr.bf16.mxu0 (!%p235_p7), %v2496_v40  ;;  %658 = vmatprep.mubr.bf16.mxu1 (!%p235_p7), %v2496_v40  ;;  %s2204_s24 = sshll.u32 (!%p235_p7), %s2197_s15, 3 }
  0x2c   : > { %s2384_s28 = smul.u32 (!%p235_p7), 320, %s241_s27  ;;  %p266_p8 = scmp.lt.s32.totalorder (!%p235_p7), %s2204_s24, 15 }
  0x2e   : > { %s2642_s29 = scalar_lea.vmem (!%p235_p7), [#allocation2], %s2384_s28 }
  0x2f   : > { %v272_v41 = vld [vmem:[%s2642_s29] sm:$0xff] (!%p235_p7)  ;;  %v273_v43 = vld [vmem:[%s2642_s29 + $0x8] sm:$0xff] (!%p235_p7)  ;;  %v274_v12 = vld [vmem:[%s2642_s29 + $0x10] sm:$0xff] (!%p235_p7) }
  0x30   : > { %v276_v42 = vld [vmem:[%s2642_s29 + $0x20] sm:$0xff] (!%p235_p7)  ;;  %v277_v45 = vld [vmem:[%s2642_s29 + $0x28] sm:$0xff] (!%p235_p7)  ;;  %v278_v13 = vld [vmem:[%s2642_s29 + $0x30] sm:$0xff] (!%p235_p7) }
  0x31   : > { %v2211_v44 = vcombine.high (!%p235_p7), %v272_v41, %v276_v42  ;;  %v2210_v46 = vcombine.low (!%p235_p7), %v272_v41, %v276_v42  ;;  %v280_v47 = vld [vmem:[%s2642_s29 + $0x40] sm:$0xff] (!%p235_p7)  ;;  %v2213_v49 = vcombine.high (!%p235_p7), %v273_v43, %v277_v45  ;;  %v2212_v50 = vcombine.low (!%p235_p7), %v273_v43, %v277_v45  ;;  %v281_v52 = vld [vmem:[%s2642_s29 + $0x48] sm:$0xff] (!%p235_p7)  ;;  %v275_v16 = vld [vmem:[%s2642_s29 + $0x18] sm:$0xff] (!%p235_p7) }
  0x32   : > { %v284_v48 = vld [vmem:[%s2642_s29 + $0x60] sm:$0xff]  ;;  %v285_v53 = vld [vmem:[%s2642_s29 + $0x68] sm:$0xff]  ;;  %v279_v17 = vld [vmem:[%s2642_s29 + $0x38] sm:$0xff]  ;;  %v2215_v21 = vcombine.high %v274_v12, %v278_v13  ;;  %v2214_v26 = vcombine.low %v274_v12, %v278_v13  ;;  %s2907_s24 = smov (!%p266_p8, %s2204_s24), 15 }
  0x33   : > { %v2219_v51 = vcombine.high %v280_v47, %v284_v48  ;;  %v288_v54 = vld [vmem:[%s2642_s29 + $0x80] sm:$0xff]  ;;  %553 = vmatprep.subr.bf16.mxu0 %v2211_v44  ;;  %v2221_v55 = vcombine.high %v281_v52, %v285_v53  ;;  %v289_v57 = vld [vmem:[%s2642_s29 + $0x88] sm:$0xff]  ;;  %626 = vmatprep.subr.bf16.mxu1 %v2213_v49  ;;  %v2218_v59 = vcombine.low %v280_v47, %v284_v48  ;;  %v282_v24 = vld [vmem:[%s2642_s29 + $0x50] sm:$0xff]  ;;  %s2205_s14 = sshll.u32 %s2907_s24, 2 }
  0x34   : > { %v292_v56 = vld [vmem:[%s2642_s29 + $0xa0] sm:$0xff]  ;;  %v293_v58 = vld [vmem:[%s2642_s29 + $0xa8] sm:$0xff]  ;;  %554 = vmatpush1.bf16.msra.mxu0 %v2210_v46  ;;  %627 = vmatpush1.bf16.msra.mxu1 %v2212_v50  ;;  %v2220_v60 = vcombine.low %v281_v52, %v285_v53  ;;  %v2217_v22 = vcombine.high %v275_v16, %v279_v17  ;;  %v286_v25 = vld [vmem:[%s2642_s29 + $0x70] sm:$0xff]  ;;  %v2216_v29 = vcombine.low %v275_v16, %v279_v17  ;;  %s2834_s26 = scalar_lea.vmem %s2900_s3, %s2205_s14 }
  0x35   : > { %555 = vmatprep.subr.bf16.mxu0 %v2219_v51  ;;  %v2227_v61 = vcombine.high %v288_v54, %v292_v56  ;;  %628 = vmatprep.subr.bf16.mxu1 %v2221_v55  ;;  %v2229_v62 = vcombine.high %v289_v57, %v293_v58  ;;  %v296_v63 = vld [vmem:[%s2642_s29 + $0xc0] sm:$0xff]  ;;  %v297_v1 = vld [vmem:[%s2642_s29 + $0xc8] sm:$0xff]  ;;  %v2226_v3 = vcombine.low %v288_v54, %v292_v56  ;;  %v283_v27 = vld [vmem:[%s2642_s29 + $0x58] sm:$0xff] }
  0x36   : > { %v300_v0 = vld [vmem:[%s2642_s29 + $0xe0] sm:$0xff]  ;;  %v301_v2 = vld [vmem:[%s2642_s29 + $0xe8] sm:$0xff]  ;;  %v2228_v4 = vcombine.low %v289_v57, %v293_v58  ;;  %v287_v28 = vld [vmem:[%s2642_s29 + $0x78] sm:$0xff]  ;;  %v2223_v30 = vcombine.high %v282_v24, %v286_v25  ;;  %v2222_v36 = vcombine.low %v282_v24, %v286_v25 }
  0x37   : > { %v2235_v5 = vcombine.high %v296_v63, %v300_v0  ;;  %v2237_v6 = vcombine.high %v297_v1, %v301_v2  ;;  %v304_v7 = vld [vmem:[%s2642_s29 + $0x100] sm:$0xff]  ;;  %v305_v9 = vld [vmem:[%s2642_s29 + $0x108] sm:$0xff]  ;;  %v2234_v11 = vcombine.low %v296_v63, %v300_v0  ;;  %v2236_v14 = vcombine.low %v297_v1, %v301_v2  ;;  %v290_v31 = vld [vmem:[%s2642_s29 + $0x90] sm:$0xff] }
  0x38   : > { %556 = vmatpush1.bf16.msra.mxu0 %v2218_v59  ;;  %629 = vmatpush1.bf16.msra.mxu1 %v2220_v60  ;;  %v308_v8 = vld [vmem:[%s2642_s29 + $0x120] sm:$0xff]  ;;  %v309_v10 = vld [vmem:[%s2642_s29 + $0x128] sm:$0xff]  ;;  %v294_v32 = vld [vmem:[%s2642_s29 + $0xb0] sm:$0xff]  ;;  %v2225_v33 = vcombine.high %v283_v27, %v287_v28  ;;  %v2224_v37 = vcombine.low %v283_v27, %v287_v28 }
  0x39   : > { %557 = vmatprep.subr.bf16.mxu0 %v2227_v61  ;;  %630 = vmatprep.subr.bf16.mxu1 %v2229_v62  ;;  %v2243_v15 = vcombine.high %v304_v7, %v308_v8  ;;  %v2245_v18 = vcombine.high %v305_v9, %v309_v10  ;;  %v2242_v19 = vcombine.low %v304_v7, %v308_v8  ;;  %v291_v34 = vld [vmem:[%s2642_s29 + $0x98] sm:$0xff]  ;;  %v2413_v41 = vld [vmem:[%s2898_s1 + $0x8] sm:$0xff]   ;;  %v298_v42 = vld [vmem:[%s2642_s29 + $0xd0] sm:$0xff] }
  0x3a   : > { %v2244_v20 = vcombine.low %v305_v9, %v309_v10  ;;  %v295_v35 = vld [vmem:[%s2642_s29 + $0xb8] sm:$0xff]  ;;  %v2231_v38 = vcombine.high %v290_v31, %v294_v32  ;;  %v302_v43 = vld [vmem:[%s2642_s29 + $0xf0] sm:$0xff]  ;;  %v2230_v46 = vcombine.low %v290_v31, %v294_v32 }
  0x3b   : > { %v2233_v39 = vcombine.high %v291_v34, %v295_v35  ;;  %v299_v44 = vld [vmem:[%s2642_s29 + $0xd8] sm:$0xff]  ;;  %v2232_v47 = vcombine.low %v291_v34, %v295_v35  ;;  %v2239_v48 = vcombine.high %v298_v42, %v302_v43  ;;  %v306_v50 = vld [vmem:[%s2642_s29 + $0x110] sm:$0xff]  ;;  %v2238_v54 = vcombine.low %v298_v42, %v302_v43 }
  0x3c   : > { %558 = vmatpush1.bf16.msra.mxu0 %v2226_v3  ;;  %631 = vmatpush1.bf16.msra.mxu1 %v2228_v4  ;;  %v303_v45 = vld [vmem:[%s2642_s29 + $0xf8] sm:$0xff]  ;;  %v310_v51 = vld [vmem:[%s2642_s29 + $0x130] sm:$0xff] }
  0x3d   : > { %559 = vmatprep.subr.bf16.mxu0 %v2235_v5  ;;  %632 = vmatprep.subr.bf16.mxu1 %v2237_v6  ;;  %v2241_v49 = vcombine.high %v299_v44, %v303_v45  ;;  %v307_v52 = vld [vmem:[%s2642_s29 + $0x118] sm:$0xff]  ;;  %v2240_v55 = vcombine.low %v299_v44, %v303_v45  ;;  %v2247_v56 = vcombine.high %v306_v50, %v310_v51  ;;  %v2414_v57 = vld [vmem:[%s2898_s1 + $0x10] sm:$0xff]  }
  0x3e   : > { %v311_v53 = vld [vmem:[%s2642_s29 + $0x138] sm:$0xff]  ;;  %v2246_v59 = vcombine.low %v306_v50, %v310_v51 }
  0x3f   : > { %v2249_v58 = vcombine.high %v307_v52, %v311_v53  ;;  %v2248_v60 = vcombine.low %v307_v52, %v311_v53  ;;  %v2415_v61 = vld [vmem:[%s2898_s1 + $0x18] sm:$0xff]  }
  0x40   : > { %560 = vmatpush1.bf16.msra.mxu0 %v2234_v11  ;;  %633 = vmatpush1.bf16.msra.mxu1 %v2236_v14 }
  0x41   : > { %561 = vmatprep.subr.bf16.mxu0 %v2243_v15  ;;  %634 = vmatprep.subr.bf16.mxu1 %v2245_v18 }
  0x44   : > { %562 = vmatpush1.bf16.msra.mxu0 %v2242_v19  ;;  %635 = vmatpush1.bf16.msra.mxu1 %v2244_v20 }
  0x45   : > { %699 = vmatprep.subr.bf16.mxu0 %v2215_v21  ;;  %772 = vmatprep.subr.bf16.mxu1 %v2217_v22 }
  0x47   : > { %2250 = vmatmul.mubr.msk.bf16.vlgmr.msra.gmra.mrb[0].mxu0 %vm540_vm0, %v2671_v23  ;;  %2254 = vmatmul.mubr.msk.bf16.vlgmr.msra.gmra.mrb[0].mxu1 %vm540_vm0, %v2671_v23 }
  0x48   : > { %700 = vmatpush1.bf16.msra.mxu0 %v2214_v26  ;;  %773 = vmatpush1.bf16.msra.mxu1 %v2216_v29 }
  0x49   : > { %595 = vmatprep.mubr.bf16.mxu0 %v2496_v40  ;;  %668 = vmatprep.mubr.bf16.mxu1 %v2496_v40 }
  0x4a   : > { %701 = vmatprep.subr.bf16.mxu0 %v2223_v30  ;;  %774 = vmatprep.subr.bf16.mxu1 %v2225_v33 }
  0x4c   : > { %702 = vmatpush1.bf16.msra.mxu0 %v2222_v36  ;;  %775 = vmatpush1.bf16.msra.mxu1 %v2224_v37 }
  0x4d   : > { %703 = vmatprep.subr.bf16.mxu0 %v2231_v38  ;;  %776 = vmatprep.subr.bf16.mxu1 %v2233_v39  ;;  %v2737_v38 = vld [vmem:[%s2899_s2] sm:$0xff]   ;;  %v2417_v39 = vld [vmem:[%s2899_s2 + $0x8] sm:$0xff]  }
  0x4f   : > { %2251 = vmatmul.mubr.msk.bf16.gmra.mrb[4].mxu0 %vm540_vm0, %v2413_v41  ;;  %2255 = vmatmul.mubr.msk.bf16.gmra.mrb[4].mxu1 %vm540_vm0, %v2413_v41 }
  0x50   : > { %605 = vmatprep.mubr.bf16.mxu0 %v2496_v40  ;;  %678 = vmatprep.mubr.bf16.mxu1 %v2496_v40 }
  0x51   : > { %704 = vmatpush1.bf16.msra.mxu0 %v2230_v46  ;;  %777 = vmatpush1.bf16.msra.mxu1 %v2232_v47 }
  0x52   : > { %705 = vmatprep.subr.bf16.mxu0 %v2239_v48  ;;  %778 = vmatprep.subr.bf16.mxu1 %v2241_v49 }
  0x55   : > { %706 = vmatpush1.bf16.msra.mxu0 %v2238_v54  ;;  %779 = vmatpush1.bf16.msra.mxu1 %v2240_v55 }
  0x56   : > { %707 = vmatprep.subr.bf16.mxu0 %v2247_v56  ;;  %780 = vmatprep.subr.bf16.mxu1 %v2249_v58 }
  0x57   : > { %2252 = vmatmul.mubr.msk.bf16.gmra.mrb[8].mxu0 %vm540_vm0, %v2414_v57  ;;  %2256 = vmatmul.mubr.msk.bf16.gmra.mrb[8].mxu1 %vm540_vm0, %v2414_v57 }
  0x58   : > { %615 = vmatprep.mubr.bf16.mxu0 %v2496_v40  ;;  %688 = vmatprep.mubr.bf16.mxu1 %v2496_v40 }
  0x59   : > { %708 = vmatpush1.bf16.msra.mxu0 %v2246_v59  ;;  %781 = vmatpush1.bf16.msra.mxu1 %v2248_v60 }
  0x5f   : > { %2253 = vmatmul.mubr.msk.bf16.gmra.mrb[12].mxu0 %vm540_vm0, %v2415_v61  ;;  %2257 = vmatmul.mubr.msk.bf16.gmra.mrb[12].mxu1 %vm540_vm0, %v2415_v61 }
  0x60   : > { %731 = vmatprep.mubr.bf16.mxu0 %v2496_v40  ;;  %804 = vmatprep.mubr.bf16.mxu1 %v2496_v40 }
  0x67   : > { %2258 = vmatmul.mubr.msk.bf16.vlgmr.msra.gmra.mrb[16].mxu0 %vm540_vm0, %v2671_v23  ;;  %2262 = vmatmul.mubr.msk.bf16.vlgmr.msra.gmra.mrb[16].mxu1 %vm540_vm0, %v2671_v23 }
  0x68   : > { %741 = vmatprep.mubr.bf16.mxu0 %v2496_v40  ;;  %814 = vmatprep.mubr.bf16.mxu1 %v2496_v40 }
  0x6f   : > { %2259 = vmatmul.mubr.msk.bf16.gmra.mrb[20].mxu0 %vm540_vm0, %v2413_v41  ;;  %2263 = vmatmul.mubr.msk.bf16.gmra.mrb[20].mxu1 %vm540_vm0, %v2413_v41 }
  0x70   : > { %751 = vmatprep.mubr.bf16.mxu0 %v2496_v40  ;;  %824 = vmatprep.mubr.bf16.mxu1 %v2496_v40 }
  0x77   : > { %2260 = vmatmul.mubr.msk.bf16.gmra.mrb[24].mxu0 %vm540_vm0, %v2414_v57  ;;  %2264 = vmatmul.mubr.msk.bf16.gmra.mrb[24].mxu1 %vm540_vm0, %v2414_v57 }
  0x78   : > { %761 = vmatprep.mubr.bf16.mxu0 %v2496_v40  ;;  %834 = vmatprep.mubr.bf16.mxu1 %v2496_v40 }
  0x7f   : > { %2261 = vmatmul.mubr.msk.bf16.gmra.mrb[28].mxu0 %vm540_vm0, %v2415_v61  ;;  %2265 = vmatmul.mubr.msk.bf16.gmra.mrb[28].mxu1 %vm540_vm0, %v2415_v61 }
  0x80   : > { %946 = vmatprep.mubr.bf16.mxu0 %v2496_v40  ;;  %999 = vmatprep.mubr.bf16.mxu1 %v2496_v40 }
 0x11a   : > { %v587_v62 = vpop.f32.mrb[0].mxu0  ;;  %v660_v63 = vpop.f32.mrb[0].mxu1 }
 0x11b   : > { %v589_v0 = vpop.f32.mrb[1].mxu0  ;;  %v662_v1 = vpop.f32.mrb[1].mxu1  ;;  %v845_v3 = vmax.f32 %v587_v62, 0.0  ;;  %v847_v7 = vmax.f32 %v660_v63, 0.0 }
 0x11c   : > { %v591_v2 = vpop.f32.mrb[2].mxu0  ;;  %v664_v5 = vpop.f32.mrb[2].mxu1  ;;  %v846_v8 = vmax.f32 %v589_v0, 0.0  ;;  %v848_v12 = vmax.f32 %v662_v1, 0.0 }
 0x11d   : > { %v853_v4 = vmax.f32 %v591_v2, 0.0  ;;  %v593_v6 = vpop.f32.mrb[3].mxu0  ;;  %v855_v9 = vmax.f32 %v664_v5, 0.0  ;;  %v666_v11 = vpop.f32.mrb[3].mxu1 }
 0x11e   : > { %v854_v10 = vmax.f32 %v593_v6, 0.0  ;;  %v856_v14 = vmax.f32 %v666_v11, 0.0 }
 0x11f   : > { %v877_v13 = vpack.c.bf16 %v853_v4, %v845_v3  ;;  %v879_v15 = vpack.c.bf16 %v855_v9, %v847_v7 }
 0x120   : > { %v878_v16 = vpack.c.bf16 %v854_v10, %v846_v8  ;;  %v880_v17 = vpack.c.bf16 %v856_v14, %v848_v12 }
 0x122   : > { %v597_v18 = vpop.f32.mrb[4].mxu0  ;;  %914 = vmatprep.subr.bf16.mxu0 %v878_v16  ;;  %v670_v19 = vpop.f32.mrb[4].mxu1  ;;  %967 = vmatprep.subr.bf16.mxu1 %v880_v17  ;;  %v1150_v17 = vlaneseq }
 0x123   : > { %v599_v20 = vpop.f32.mrb[5].mxu0  ;;  %915 = vmatpush1.bf16.msra.mxu0 %v877_v13  ;;  %v672_v21 = vpop.f32.mrb[5].mxu1  ;;  %968 = vmatpush1.bf16.msra.mxu1 %v879_v15  ;;  %v861_v23 = vmax.f32 %v597_v18, 0.0  ;;  %v863_v27 = vmax.f32 %v670_v19, 0.0 }
 0x124   : > { %v601_v22 = vpop.f32.mrb[6].mxu0  ;;  %v674_v25 = vpop.f32.mrb[6].mxu1  ;;  %v862_v28 = vmax.f32 %v599_v20, 0.0  ;;  %v864_v32 = vmax.f32 %v672_v21, 0.0  ;;  %v1151_v18 = vshrl.u32 %v1150_v17, 7 }
 0x125   : > { %v869_v24 = vmax.f32 %v601_v22, 0.0  ;;  %v603_v26 = vpop.f32.mrb[7].mxu0  ;;  %v871_v29 = vmax.f32 %v674_v25, 0.0  ;;  %v676_v31 = vpop.f32.mrb[7].mxu1 }
 0x126   : > { %v870_v30 = vmax.f32 %v603_v26, 0.0  ;;  %v872_v34 = vmax.f32 %v676_v31, 0.0  ;;  %vm2350_vm2 = vcmp.ne.s32.totalorder %v1151_v18, 0 }
 0x127   : > { %v885_v33 = vpack.c.bf16 %v869_v24, %v861_v23  ;;  %v887_v35 = vpack.c.bf16 %v871_v29, %v863_v27  ;;  %vm2762_vm4 = vmpackc.low %vm2497_vm3, %vm2350_vm2 }
 0x128   : > { %v886_v36 = vpack.c.bf16 %v870_v30, %v862_v28  ;;  %v888_v37 = vpack.c.bf16 %v872_v34, %v864_v32 }
 0x12a   : > { %916 = vmatprep.subr.bf16.mxu0 %v886_v36  ;;  %969 = vmatprep.subr.bf16.mxu1 %v888_v37 }
 0x12b   : > { %917 = vmatpush1.bf16.msra.mxu0 %v885_v33  ;;  %970 = vmatpush1.bf16.msra.mxu1 %v887_v35 }
 0x12e   : > { %2268 = vmatmul.mubr.msk.bf16.vlgmr.msra.gmra.mrb[32].mxu0 %vm907_vm1, %v2737_v38  ;;  %2270 = vmatmul.mubr.msk.bf16.vlgmr.msra.gmra.mrb[32].mxu1 %vm907_vm1, %v2737_v38 }
 0x12f   : > { %956 = vmatprep.mubr.bf16.mxu0 %v2496_v40  ;;  %1009 = vmatprep.mubr.bf16.mxu1 %v2496_v40 }
 0x136   : > { %2269 = vmatmul.mubr.msk.bf16.gmra.mrb[36].mxu0 %vm907_vm1, %v2417_v39  ;;  %2271 = vmatmul.mubr.msk.bf16.gmra.mrb[36].mxu1 %vm907_vm1, %v2417_v39 }
 0x137   : > { %1052 = vmatprep.mubr.bf16.mxu0 %v2496_v40  ;;  %1105 = vmatprep.mubr.bf16.mxu1 %v2496_v40 }
 0x13a   : > { %v733_v41 = vpop.f32.mrb[16].mxu0  ;;  %v806_v42 = vpop.f32.mrb[16].mxu1 }
 0x13b   : > { %v735_v43 = vpop.f32.mrb[17].mxu0  ;;  %v808_v44 = vpop.f32.mrb[17].mxu1  ;;  %v849_v46 = vmax.f32 %v733_v41, 0.0  ;;  %v851_v50 = vmax.f32 %v806_v42, 0.0  ;;  %v2498_v41 = vmov 1966171168  }
 0x13c   : > { %v737_v45 = vpop.f32.mrb[18].mxu0  ;;  %v810_v48 = vpop.f32.mrb[18].mxu1  ;;  %v850_v51 = vmax.f32 %v735_v43, 0.0  ;;  %v852_v55 = vmax.f32 %v808_v44, 0.0  ;;  %v2088_v42 = vunpack.c.l.s4 %v2498_v41 }
 0x13d   : > { %v857_v47 = vmax.f32 %v737_v45, 0.0  ;;  %v739_v49 = vpop.f32.mrb[19].mxu0  ;;  %v859_v52 = vmax.f32 %v810_v48, 0.0  ;;  %v812_v54 = vpop.f32.mrb[19].mxu1 }
 0x13e   : > { %v858_v53 = vmax.f32 %v739_v49, 0.0  ;;  %v860_v57 = vmax.f32 %v812_v54, 0.0 }
 0x13f   : > { %v881_v56 = vpack.c.bf16 %v857_v47, %v849_v46  ;;  %v883_v58 = vpack.c.bf16 %v859_v52, %v851_v50 }
 0x140   : > { %v882_v59 = vpack.c.bf16 %v858_v53, %v850_v51  ;;  %v884_v60 = vpack.c.bf16 %v860_v57, %v852_v55  ;;  %v2089_v51 = vunpack.c.0.s8 %v2088_v42 }
 0x142   : > { %v743_v61 = vpop.f32.mrb[20].mxu0  ;;  %1020 = vmatprep.subr.bf16.mxu0 %v882_v59  ;;  %v816_v62 = vpop.f32.mrb[20].mxu1  ;;  %1073 = vmatprep.subr.bf16.mxu1 %v884_v60  ;;  %v2779_v59 = vsub.s32 %v2089_v51, %v1151_v18 }
 0x143   : > { %v745_v63 = vpop.f32.mrb[21].mxu0  ;;  %1021 = vmatpush1.bf16.msra.mxu0 %v881_v56  ;;  %v818_v0 = vpop.f32.mrb[21].mxu1  ;;  %1074 = vmatpush1.bf16.msra.mxu1 %v883_v58  ;;  %v865_v2 = vmax.f32 %v743_v61, 0.0  ;;  %v867_v6 = vmax.f32 %v816_v62, 0.0  ;;  %v2777_v56 = vld [vmem:[%s2899_s2 + $0x10] sm:$0xff]  }
 0x144   : > { %v747_v1 = vpop.f32.mrb[22].mxu0  ;;  %v820_v4 = vpop.f32.mrb[22].mxu1  ;;  %v866_v7 = vmax.f32 %v745_v63, 0.0  ;;  %v868_v11 = vmax.f32 %v818_v0, 0.0 }
 0x145   : > { %v873_v3 = vmax.f32 %v747_v1, 0.0  ;;  %v749_v5 = vpop.f32.mrb[23].mxu0  ;;  %v875_v8 = vmax.f32 %v820_v4, 0.0  ;;  %v822_v10 = vpop.f32.mrb[23].mxu1 }
 0x146   : > { %v874_v9 = vmax.f32 %v749_v5, 0.0  ;;  %v876_v13 = vmax.f32 %v822_v10, 0.0 }
 0x147   : > { %v889_v12 = vpack.c.bf16 %v873_v3, %v865_v2  ;;  %v891_v14 = vpack.c.bf16 %v875_v8, %v867_v6  ;;  %v2796_v2 = vld [vmem:[%s2899_s2 + $0x18] sm:$0xff]  }
 0x148   : > { %v890_v15 = vpack.c.bf16 %v874_v9, %v866_v7  ;;  %v892_v16 = vpack.c.bf16 %v876_v13, %v868_v11 }
 0x14a   : > { %1022 = vmatprep.subr.bf16.mxu0 %v890_v15  ;;  %1075 = vmatprep.subr.bf16.mxu1 %v892_v16 }
 0x14b   : > { %1023 = vmatpush1.bf16.msra.mxu0 %v889_v12  ;;  %1076 = vmatpush1.bf16.msra.mxu1 %v891_v14 }
 0x14e   : > { %2272 = vmatmul.mubr.msk.bf16.vlgmr.msra.gmra.mrb[40].mxu0 %vm907_vm1, %v2737_v38  ;;  %2274 = vmatmul.mubr.msk.bf16.vlgmr.msra.gmra.mrb[40].mxu1 %vm907_vm1, %v2737_v38 }
 0x14f   : > { %1062 = vmatprep.mubr.bf16.mxu0 %v2496_v40  ;;  %1115 = vmatprep.mubr.bf16.mxu1 %v2496_v40 }
 0x156   : > { %2273 = vmatmul.mubr.msk.bf16.gmra.mrb[44].mxu0 %vm907_vm1, %v2417_v39  ;;  %2275 = vmatmul.mubr.msk.bf16.gmra.mrb[44].mxu1 %vm907_vm1, %v2417_v39 }
 0x157   : > { %1259 = vmatprep.mubr.bf16.mxu0 %v2496_v40  ;;  %1312 = vmatprep.mubr.bf16.mxu1 %v2496_v40 }
 0x201   : > { %v948_v19 = vpop.f32.mrb[32].mxu0  ;;  %v1001_v21 = vpop.f32.mrb[32].mxu1 }
 0x202   : > { %v1126_v20 = vmin.f32 %v948_v19, 80.0  ;;  %v950_v22 = vpop.f32.mrb[33].mxu0  ;;  %v1128_v23 = vmin.f32 %v1001_v21, 80.0  ;;  %v1003_v25 = vpop.f32.mrb[33].mxu1 }
 0x203   : > { %v1127_v24 = vmin.f32 %v950_v22, 80.0  ;;  %v952_v26 = vpop.f32.mrb[34].mxu0  ;;  %v1129_v28 = vmin.f32 %v1003_v25, 80.0  ;;  %v1005_v30 = vpop.f32.mrb[34].mxu1 }
 0x204   : > { %v1134_v27 = vmul.f32 1.442695, %v1126_v20  ;;  %v2284_v29 = vpack.c.bf16 %v952_v26, %v948_v19  ;;  %v954_v31 = vpop.f32.mrb[35].mxu0  ;;  %v1138_v33 = vmul.f32 1.442695, %v1128_v23  ;;  %v2294_v35 = vpack.c.bf16 %v1005_v30, %v1001_v21  ;;  %v1007_v37 = vpop.f32.mrb[35].mxu1 }
 0x205   : > { %v1136_v34 = vmul.f32 1.442695, %v1127_v24  ;;  %v2280_v36 = vpack.c.bf16 %v954_v31, %v950_v22  ;;  %v1140_v38 = vmul.f32 1.442695, %v1129_v28  ;;  %v2290_v39 = vpack.c.bf16 %v1007_v37, %v1003_v25 }
 0x206   : > { %2424 = vpow2.f32 %v1134_v27 }
 0x207   : > { %2426 = vpow2.f32 %v1138_v33  ;;  %2281 = vmatprep.subr.msk.bf16.mxu0 %vm2762_vm4, %v2280_v36  ;;  %2291 = vmatprep.subr.msk.bf16.mxu1 %vm2762_vm4, %v2290_v39 }
 0x208   : > { %2428 = vpow2.f32 %v1136_v34  ;;  %2285 = vmatpush1.bf16.msk.msra.mxu0 %vm2762_vm4, %v2284_v29  ;;  %2295 = vmatpush1.bf16.msk.msra.mxu1 %vm2762_vm4, %v2294_v35 }
 0x209   : > { %2430 = vpow2.f32 %v1140_v38  ;;  %v958_v43 = vpop.f32.mrb[36].mxu0  ;;  %v1011_v44 = vpop.f32.mrb[36].mxu1 }
 0x20a   : > { %v960_v45 = vpop.f32.mrb[37].mxu0  ;;  %v1013_v46 = vpop.f32.mrb[37].mxu1 }
 0x20b   : > { %v962_v47 = vpop.f32.mrb[38].mxu0  ;;  %v1015_v49 = vpop.f32.mrb[38].mxu1 }
 0x20c   : > { %v1199_v48 = vpack.c.bf16 %v962_v47, %v958_v43  ;;  %v964_v50 = vpop.f32.mrb[39].mxu0  ;;  %v1201_v52 = vpack.c.bf16 %v1015_v49, %v1011_v44  ;;  %v1017_v54 = vpop.f32.mrb[39].mxu1 }
 0x20d   : > { %v1200_v53 = vpack.c.bf16 %v964_v50, %v960_v45  ;;  %v1202_v55 = vpack.c.bf16 %v1017_v54, %v1013_v46 }
 0x20f   : > { %1229 = vmatprep.subr.bf16.mxu0 %v1200_v53  ;;  %1282 = vmatprep.subr.bf16.mxu1 %v1202_v55 }
 0x210   : > { %v2425_v57 = vpop.eup %2424  ;;  %1230 = vmatpush1.bf16.msra.mxu0 %v1199_v48  ;;  %1283 = vmatpush1.bf16.msra.mxu1 %v1201_v52 }
 0x211   : > { %v2427_v58 = vpop.eup %2426 }
 0x212   : > { %v2429_v60 = vpop.eup %2428 }
 0x213   : > { %v2431_v61 = vpop.eup %2430  ;;  %v2083_v62 = vcombine.low %v2425_v57, %v2429_v60  ;;  %2286 = vmatmul.mubr.msk.bf16.vlgmr.msra.gmra.mrb[8].mxu0 %vm907_vm1, %v2777_v56  ;;  %2296 = vmatmul.mubr.msk.bf16.vlgmr.msra.gmra.mrb[8].mxu1 %vm907_vm1, %v2777_v56 }
 0x214   : > { %v2084_v63 = vcombine.low %v2427_v58, %v2431_v61  ;;  %1269 = vmatprep.mubr.bf16.mxu0 %v2496_v40  ;;  %1322 = vmatprep.mubr.bf16.mxu1 %v2496_v40 }
 0x215   : > { %v2787_v0 = vrot.slane %v2083_v62, %v2779_v59 }
 0x216   : > { %v2791_v1 = vrot.slane %v2084_v63, %v2779_v59 }
 0x218   : > { %v2115_v3 = vcombine.low %v2787_v0, %v2791_v1 }
 0x21a   : > { %v2123_v46 = vrot.slane %v2115_v3, %v2779_v59 }
 0x21b   : > { %2287 = vmatmul.mubr.msk.bf16.gmra.mrb[12].mxu0 %vm907_vm1, %v2796_v2  ;;  %2297 = vmatmul.mubr.msk.bf16.gmra.mrb[12].mxu1 %vm907_vm1, %v2796_v2 }
 0x21c   : > { %1365 = vmatprep.mubr.bf16.mxu0 %v2496_v40  ;;  %1418 = vmatprep.mubr.bf16.mxu1 %v2496_v40 }
 0x221   : > { %v1054_v4 = vpop.f32.mrb[40].mxu0  ;;  %v1107_v6 = vpop.f32.mrb[40].mxu1 }
 0x222   : > { %v1130_v5 = vmin.f32 %v1054_v4, 80.0  ;;  %v1056_v7 = vpop.f32.mrb[41].mxu0  ;;  %v1132_v8 = vmin.f32 %v1107_v6, 80.0  ;;  %v1109_v10 = vpop.f32.mrb[41].mxu1 }
 0x223   : > { %v1131_v9 = vmin.f32 %v1056_v7, 80.0  ;;  %v1058_v11 = vpop.f32.mrb[42].mxu0  ;;  %v1133_v13 = vmin.f32 %v1109_v10, 80.0  ;;  %v1111_v15 = vpop.f32.mrb[42].mxu1 }
 0x224   : > { %v1142_v12 = vmul.f32 1.442695, %v1130_v5  ;;  %v2304_v14 = vpack.c.bf16 %v1058_v11, %v1054_v4  ;;  %v1060_v16 = vpop.f32.mrb[43].mxu0  ;;  %v1146_v17 = vmul.f32 1.442695, %v1132_v8  ;;  %v2314_v19 = vpack.c.bf16 %v1111_v15, %v1107_v6  ;;  %v1113_v21 = vpop.f32.mrb[43].mxu1 }
 0x225   : > { %v1144_v18 = vmul.f32 1.442695, %v1131_v9  ;;  %v2300_v20 = vpack.c.bf16 %v1060_v16, %v1056_v7  ;;  %v1148_v22 = vmul.f32 1.442695, %v1133_v13  ;;  %v2310_v23 = vpack.c.bf16 %v1113_v21, %v1109_v10 }
 0x226   : > { %2432 = vpow2.f32 %v1142_v12 }
 0x227   : > { %2434 = vpow2.f32 %v1146_v17  ;;  %2301 = vmatprep.subr.msk.bf16.mxu0 %vm2762_vm4, %v2300_v20  ;;  %2311 = vmatprep.subr.msk.bf16.mxu1 %vm2762_vm4, %v2310_v23 }
 0x228   : > { %2436 = vpow2.f32 %v1144_v18  ;;  %2305 = vmatpush1.bf16.msk.msra.mxu0 %vm2762_vm4, %v2304_v14  ;;  %2315 = vmatpush1.bf16.msk.msra.mxu1 %vm2762_vm4, %v2314_v19 }
 0x229   : > { %2438 = vpow2.f32 %v1148_v22  ;;  %v1064_v24 = vpop.f32.mrb[44].mxu0  ;;  %v1117_v25 = vpop.f32.mrb[44].mxu1 }
 0x22a   : > { %v1066_v26 = vpop.f32.mrb[45].mxu0  ;;  %v1119_v27 = vpop.f32.mrb[45].mxu1 }
 0x22b   : > { %v1068_v28 = vpop.f32.mrb[46].mxu0  ;;  %v1121_v30 = vpop.f32.mrb[46].mxu1 }
 0x22c   : > { %v1203_v29 = vpack.c.bf16 %v1068_v28, %v1064_v24  ;;  %v1070_v31 = vpop.f32.mrb[47].mxu0  ;;  %v1205_v33 = vpack.c.bf16 %v1121_v30, %v1117_v25  ;;  %v1123_v35 = vpop.f32.mrb[47].mxu1  ;;  %v2420_v25 = vld [vmem:[%s2899_s2 + $0x20] sm:$0xff]  }
 0x22d   : > { %v1204_v34 = vpack.c.bf16 %v1070_v31, %v1066_v26  ;;  %v1206_v36 = vpack.c.bf16 %v1123_v35, %v1119_v27  ;;  %v2421_v26 = vld [vmem:[%s2899_s2 + $0x28] sm:$0xff]  }
 0x22f   : > { %1335 = vmatprep.subr.bf16.mxu0 %v1204_v34  ;;  %1388 = vmatprep.subr.bf16.mxu1 %v1206_v36 }
 0x230   : > { %v2433_v37 = vpop.eup %2432  ;;  %1336 = vmatpush1.bf16.msra.mxu0 %v1203_v29  ;;  %1389 = vmatpush1.bf16.msra.mxu1 %v1205_v33 }
 0x231   : > { %v2435_v32 = vpop.eup %2434 }
 0x232   : > { %v2437_v38 = vpop.eup %2436 }
 0x233   : > { %v2439_v39 = vpop.eup %2438  ;;  %v2085_v41 = vcombine.low %v2433_v37, %v2437_v38  ;;  %2306 = vmatmul.mubr.msk.bf16.vlgmr.msra.gmra.mrb[24].mxu0 %vm907_vm1, %v2777_v56  ;;  %2316 = vmatmul.mubr.msk.bf16.vlgmr.msra.gmra.mrb[24].mxu1 %vm907_vm1, %v2777_v56 }
 0x234   : > { %v2086_v42 = vcombine.low %v2435_v32, %v2439_v39  ;;  %1375 = vmatprep.mubr.bf16.mxu0 %v2496_v40  ;;  %1428 = vmatprep.mubr.bf16.mxu1 %v2496_v40 }
 0x235   : > { %v2107_v43 = vrot.slane %v2085_v41, %v2779_v59 }
 0x236   : > { %v2114_v44 = vrot.slane %v2086_v42, %v2779_v59 }
 0x238   : > { %v2116_v45 = vcombine.low %v2107_v43, %v2114_v44 }
 0x23a   : > { %v2130_v47 = vrot.slane %v2116_v45, %v2779_v59 }
 0x23b   : > { %2307 = vmatmul.mubr.msk.bf16.gmra.mrb[28].mxu0 %vm907_vm1, %v2796_v2  ;;  %2317 = vmatmul.mubr.msk.bf16.gmra.mrb[28].mxu1 %vm907_vm1, %v2796_v2 }
 0x23c   : > { %v2131_v48 = vcombine.low %v2123_v46, %v2130_v47  ;;  %1571 = vmatprep.mubr.bf16.mxu0 %v2496_v40  ;;  %1624 = vmatprep.mubr.bf16.mxu1 %v2496_v40 }
 0x23e   : > { %2346 = vst [vmem:[%s2834_s26 + $0x3] ss:$4 sm:$0xff] %v2131_v48 }
 0x2e6   : > { %v1261_v49 = vpop.f32.mrb[8].mxu0  ;;  %v1314_v50 = vpop.f32.mrb[8].mxu1 }
 0x2e7   : > { %v1263_v51 = vpop.f32.mrb[9].mxu0  ;;  %v1316_v52 = vpop.f32.mrb[9].mxu1  ;;  %v1471_v54 = vmax.f32 %v1261_v49, 0.0  ;;  %v1473_v58 = vmax.f32 %v1314_v50, 0.0 }
 0x2e8   : > { %v1265_v53 = vpop.f32.mrb[10].mxu0  ;;  %v1318_v56 = vpop.f32.mrb[10].mxu1  ;;  %v1472_v59 = vmax.f32 %v1263_v51, 0.0  ;;  %v1474_v63 = vmax.f32 %v1316_v52, 0.0 }
 0x2e9   : > { %v1479_v55 = vmax.f32 %v1265_v53, 0.0  ;;  %v1267_v57 = vpop.f32.mrb[11].mxu0  ;;  %v1481_v60 = vmax.f32 %v1318_v56, 0.0  ;;  %v1320_v62 = vpop.f32.mrb[11].mxu1 }
 0x2ea   : > { %v1480_v61 = vmax.f32 %v1267_v57, 0.0  ;;  %v1482_v1 = vmax.f32 %v1320_v62, 0.0 }
 0x2eb   : > { %v1503_v0 = vpack.c.bf16 %v1479_v55, %v1471_v54  ;;  %v1505_v2 = vpack.c.bf16 %v1481_v60, %v1473_v58 }
 0x2ec   : > { %v1504_v3 = vpack.c.bf16 %v1480_v61, %v1472_v59  ;;  %v1506_v4 = vpack.c.bf16 %v1482_v1, %v1474_v63 }
 0x2ee   : > { %v1271_v5 = vpop.f32.mrb[12].mxu0  ;;  %1539 = vmatprep.subr.bf16.mxu0 %v1504_v3  ;;  %v1324_v6 = vpop.f32.mrb[12].mxu1  ;;  %1592 = vmatprep.subr.bf16.mxu1 %v1506_v4 }
 0x2ef   : > { %v1273_v7 = vpop.f32.mrb[13].mxu0  ;;  %1540 = vmatpush1.bf16.msra.mxu0 %v1503_v0  ;;  %v1326_v8 = vpop.f32.mrb[13].mxu1  ;;  %1593 = vmatpush1.bf16.msra.mxu1 %v1505_v2  ;;  %v1487_v10 = vmax.f32 %v1271_v5, 0.0  ;;  %v1489_v14 = vmax.f32 %v1324_v6, 0.0 }
 0x2f0   : > { %v1275_v9 = vpop.f32.mrb[14].mxu0  ;;  %v1328_v12 = vpop.f32.mrb[14].mxu1  ;;  %v1488_v15 = vmax.f32 %v1273_v7, 0.0  ;;  %v1490_v19 = vmax.f32 %v1326_v8, 0.0 }
 0x2f1   : > { %v1495_v11 = vmax.f32 %v1275_v9, 0.0  ;;  %v1277_v13 = vpop.f32.mrb[15].mxu0  ;;  %v1497_v16 = vmax.f32 %v1328_v12, 0.0  ;;  %v1330_v18 = vpop.f32.mrb[15].mxu1 }
 0x2f2   : > { %v1496_v17 = vmax.f32 %v1277_v13, 0.0  ;;  %v1498_v21 = vmax.f32 %v1330_v18, 0.0 }
 0x2f3   : > { %v1511_v20 = vpack.c.bf16 %v1495_v11, %v1487_v10  ;;  %v1513_v22 = vpack.c.bf16 %v1497_v16, %v1489_v14 }
 0x2f4   : > { %v1512_v23 = vpack.c.bf16 %v1496_v17, %v1488_v15  ;;  %v1514_v24 = vpack.c.bf16 %v1498_v21, %v1490_v19 }
 0x2f6   : > { %1541 = vmatprep.subr.bf16.mxu0 %v1512_v23  ;;  %1594 = vmatprep.subr.bf16.mxu1 %v1514_v24 }
 0x2f7   : > { %1542 = vmatpush1.bf16.msra.mxu0 %v1511_v20  ;;  %1595 = vmatpush1.bf16.msra.mxu1 %v1513_v22 }
 0x2fa   : > { %2320 = vmatmul.mubr.msk.bf16.vlgmr.msra.gmra.mrb[48].mxu0 %vm907_vm1, %v2420_v25  ;;  %2322 = vmatmul.mubr.msk.bf16.vlgmr.msra.gmra.mrb[48].mxu1 %vm907_vm1, %v2420_v25 }
 0x2fb   : > { %1581 = vmatprep.mubr.bf16.mxu0 %v2496_v40  ;;  %1634 = vmatprep.mubr.bf16.mxu1 %v2496_v40 }
 0x302   : > { %2321 = vmatmul.mubr.msk.bf16.gmra.mrb[52].mxu0 %vm907_vm1, %v2421_v26  ;;  %2323 = vmatmul.mubr.msk.bf16.gmra.mrb[52].mxu1 %vm907_vm1, %v2421_v26 }
 0x303   : > { %1677 = vmatprep.mubr.bf16.mxu0 %v2496_v40  ;;  %1730 = vmatprep.mubr.bf16.mxu1 %v2496_v40 }
 0x306   : > { %v1367_v27 = vpop.f32.mrb[24].mxu0  ;;  %v1420_v28 = vpop.f32.mrb[24].mxu1 }
 0x307   : > { %v1369_v29 = vpop.f32.mrb[25].mxu0  ;;  %v1422_v30 = vpop.f32.mrb[25].mxu1  ;;  %v1475_v33 = vmax.f32 %v1367_v27, 0.0  ;;  %v1477_v37 = vmax.f32 %v1420_v28, 0.0 }
 0x308   : > { %v1371_v31 = vpop.f32.mrb[26].mxu0  ;;  %v1424_v35 = vpop.f32.mrb[26].mxu1  ;;  %v1476_v32 = vmax.f32 %v1369_v29, 0.0  ;;  %v1478_v42 = vmax.f32 %v1422_v30, 0.0 }
 0x309   : > { %v1483_v34 = vmax.f32 %v1371_v31, 0.0  ;;  %v1373_v36 = vpop.f32.mrb[27].mxu0  ;;  %v1485_v38 = vmax.f32 %v1424_v35, 0.0  ;;  %v1426_v41 = vpop.f32.mrb[27].mxu1 }
 0x30a   : > { %v1484_v39 = vmax.f32 %v1373_v36, 0.0  ;;  %v1486_v44 = vmax.f32 %v1426_v41, 0.0 }
 0x30b   : > { %v1507_v43 = vpack.c.bf16 %v1483_v34, %v1475_v33  ;;  %v1509_v45 = vpack.c.bf16 %v1485_v38, %v1477_v37 }
 0x30c   : > { %v1508_v46 = vpack.c.bf16 %v1484_v39, %v1476_v32  ;;  %v1510_v47 = vpack.c.bf16 %v1486_v44, %v1478_v42 }
 0x30e   : > { %v1377_v48 = vpop.f32.mrb[28].mxu0  ;;  %1645 = vmatprep.subr.bf16.mxu0 %v1508_v46  ;;  %v1430_v49 = vpop.f32.mrb[28].mxu1  ;;  %1698 = vmatprep.subr.bf16.mxu1 %v1510_v47  ;;  %v2423_v46 = vld [vmem:[%s2899_s2 + $0x38] sm:$0xff]  }
 0x30f   : > { %v1379_v50 = vpop.f32.mrb[29].mxu0  ;;  %1646 = vmatpush1.bf16.msra.mxu0 %v1507_v43  ;;  %v1432_v51 = vpop.f32.mrb[29].mxu1  ;;  %1699 = vmatpush1.bf16.msra.mxu1 %v1509_v45  ;;  %v1491_v53 = vmax.f32 %v1377_v48, 0.0  ;;  %v1493_v57 = vmax.f32 %v1430_v49, 0.0  ;;  %v2422_v45 = vld [vmem:[%s2899_s2 + $0x30] sm:$0xff]  }
 0x310   : > { %v1381_v52 = vpop.f32.mrb[30].mxu0  ;;  %v1434_v55 = vpop.f32.mrb[30].mxu1  ;;  %v1492_v58 = vmax.f32 %v1379_v50, 0.0  ;;  %v1494_v62 = vmax.f32 %v1432_v51, 0.0 }
 0x311   : > { %v1499_v54 = vmax.f32 %v1381_v52, 0.0  ;;  %v1383_v56 = vpop.f32.mrb[31].mxu0  ;;  %v1501_v59 = vmax.f32 %v1434_v55, 0.0  ;;  %v1436_v61 = vpop.f32.mrb[31].mxu1 }
 0x312   : > { %v1500_v60 = vmax.f32 %v1383_v56, 0.0  ;;  %v1502_v0 = vmax.f32 %v1436_v61, 0.0 }
 0x313   : > { %v1515_v63 = vpack.c.bf16 %v1499_v54, %v1491_v53  ;;  %v1517_v1 = vpack.c.bf16 %v1501_v59, %v1493_v57 }
 0x314   : > { %v1516_v2 = vpack.c.bf16 %v1500_v60, %v1492_v58  ;;  %v1518_v3 = vpack.c.bf16 %v1502_v0, %v1494_v62 }
 0x316   : > { %1647 = vmatprep.subr.bf16.mxu0 %v1516_v2  ;;  %1700 = vmatprep.subr.bf16.mxu1 %v1518_v3 }
 0x317   : > { %1648 = vmatpush1.bf16.msra.mxu0 %v1515_v63  ;;  %1701 = vmatpush1.bf16.msra.mxu1 %v1517_v1 }
 0x31a   : > { %2324 = vmatmul.mubr.msk.bf16.vlgmr.msra.gmra.mrb[56].mxu0 %vm907_vm1, %v2420_v25  ;;  %2326 = vmatmul.mubr.msk.bf16.vlgmr.msra.gmra.mrb[56].mxu1 %vm907_vm1, %v2420_v25 }
 0x31b   : > { %1687 = vmatprep.mubr.bf16.mxu0 %v2496_v40  ;;  %1740 = vmatprep.mubr.bf16.mxu1 %v2496_v40 }
 0x322   : > { %2325 = vmatmul.mubr.msk.bf16.gmra.mrb[60].mxu0 %vm907_vm1, %v2421_v26  ;;  %2327 = vmatmul.mubr.msk.bf16.gmra.mrb[60].mxu1 %vm907_vm1, %v2421_v26 }
 0x323   : > { %1851 = vmatprep.mubr.bf16.mxu0 %v2496_v40  ;;  %1898 = vmatprep.mubr.bf16.mxu1 %v2496_v40 }
 0x3cd   : > { %v1573_v4 = vpop.f32.mrb[48].mxu0  ;;  %v1626_v6 = vpop.f32.mrb[48].mxu1 }
 0x3ce   : > { %v1751_v5 = vmax.f32 %v1573_v4, 0.0  ;;  %v1575_v7 = vpop.f32.mrb[49].mxu0  ;;  %v1753_v8 = vmax.f32 %v1626_v6, 0.0  ;;  %v1628_v10 = vpop.f32.mrb[49].mxu1 }
 0x3cf   : > { %v1752_v9 = vmax.f32 %v1575_v7, 0.0  ;;  %v1577_v11 = vpop.f32.mrb[50].mxu0  ;;  %v1754_v12 = vmax.f32 %v1628_v10, 0.0  ;;  %v1630_v14 = vpop.f32.mrb[50].mxu1 }
 0x3d0   : > { %v1759_v13 = vmax.f32 %v1577_v11, 0.0  ;;  %v1579_v15 = vpop.f32.mrb[51].mxu0  ;;  %v1761_v16 = vmax.f32 %v1630_v14, 0.0  ;;  %v1632_v18 = vpop.f32.mrb[51].mxu1 }
 0x3d1   : > { %v1760_v17 = vmax.f32 %v1579_v15, 0.0  ;;  %v1762_v20 = vmax.f32 %v1632_v18, 0.0 }
 0x3d2   : > { %v1783_v19 = vpack.c.bf16 %v1759_v13, %v1751_v5  ;;  %v1785_v21 = vpack.c.bf16 %v1761_v16, %v1753_v8 }
 0x3d3   : > { %v1784_v22 = vpack.c.bf16 %v1760_v17, %v1752_v9  ;;  %v1786_v23 = vpack.c.bf16 %v1762_v20, %v1754_v12 }
 0x3d5   : > { %v1583_v24 = vpop.f32.mrb[52].mxu0  ;;  %1819 = vmatprep.subr.bf16.mxu0 %v1784_v22  ;;  %v1636_v26 = vpop.f32.mrb[52].mxu1  ;;  %1866 = vmatprep.subr.bf16.mxu1 %v1786_v23 }
 0x3d6   : > { %v1767_v25 = vmax.f32 %v1583_v24, 0.0  ;;  %v1585_v27 = vpop.f32.mrb[53].mxu0  ;;  %1820 = vmatpush1.bf16.msra.mxu0 %v1783_v19  ;;  %v1769_v28 = vmax.f32 %v1636_v26, 0.0  ;;  %v1638_v30 = vpop.f32.mrb[53].mxu1  ;;  %1867 = vmatpush1.bf16.msra.mxu1 %v1785_v21 }
 0x3d7   : > { %v1768_v29 = vmax.f32 %v1585_v27, 0.0  ;;  %v1587_v31 = vpop.f32.mrb[54].mxu0  ;;  %v1770_v33 = vmax.f32 %v1638_v30, 0.0  ;;  %v1640_v35 = vpop.f32.mrb[54].mxu1 }
 0x3d8   : > { %v1775_v34 = vmax.f32 %v1587_v31, 0.0  ;;  %v1589_v36 = vpop.f32.mrb[55].mxu0  ;;  %v1777_v37 = vmax.f32 %v1640_v35, 0.0  ;;  %v1642_v38 = vpop.f32.mrb[55].mxu1 }
 0x3d9   : > { %v1776_v32 = vmax.f32 %v1589_v36, 0.0  ;;  %v1778_v41 = vmax.f32 %v1642_v38, 0.0 }
 0x3da   : > { %v1791_v39 = vpack.c.bf16 %v1775_v34, %v1767_v25  ;;  %v1793_v42 = vpack.c.bf16 %v1777_v37, %v1769_v28 }
 0x3db   : > { %v1792_v43 = vpack.c.bf16 %v1776_v32, %v1768_v29  ;;  %v1794_v44 = vpack.c.bf16 %v1778_v41, %v1770_v33 }
 0x3dd   : > { %1821 = vmatprep.subr.bf16.mxu0 %v1792_v43  ;;  %1868 = vmatprep.subr.bf16.mxu1 %v1794_v44 }
 0x3de   : > { %1822 = vmatpush1.bf16.msra.mxu0 %v1791_v39  ;;  %1869 = vmatpush1.bf16.msra.mxu1 %v1793_v42 }
 0x3e1   : > { %2330 = vmatmul.mubr.msk.bf16.vlgmr.msra.gmra.mrb[64].mxu0 %vm907_vm1, %v2422_v45  ;;  %2332 = vmatmul.mubr.msk.bf16.vlgmr.msra.gmra.mrb[64].mxu1 %vm907_vm1, %v2422_v45 }
 0x3e2   : > { %1859 = vmatprep.mubr.bf16.mxu0 %v2496_v40  ;;  %1906 = vmatprep.mubr.bf16.mxu1 %v2496_v40 }
 0x3e9   : > { %2331 = vmatmul.mubr.msk.bf16.gmra.mrb[68].mxu0 %vm907_vm1, %v2423_v46  ;;  %2333 = vmatmul.mubr.msk.bf16.gmra.mrb[68].mxu1 %vm907_vm1, %v2423_v46 }
 0x3ea   : > { %1945 = vmatprep.mubr.bf16.mxu0 %v2496_v40  ;;  %1992 = vmatprep.mubr.bf16.mxu1 %v2496_v40 }
 0x3ed   : > { %v1679_v47 = vpop.f32.mrb[56].mxu0  ;;  %v1732_v48 = vpop.f32.mrb[56].mxu1 }
 0x3ee   : > { %v1681_v49 = vpop.f32.mrb[57].mxu0  ;;  %v1734_v50 = vpop.f32.mrb[57].mxu1  ;;  %v1755_v52 = vmax.f32 %v1679_v47, 0.0  ;;  %v1757_v56 = vmax.f32 %v1732_v48, 0.0 }
 0x3ef   : > { %v1683_v51 = vpop.f32.mrb[58].mxu0  ;;  %v1736_v54 = vpop.f32.mrb[58].mxu1  ;;  %v1756_v57 = vmax.f32 %v1681_v49, 0.0  ;;  %v1758_v61 = vmax.f32 %v1734_v50, 0.0 }
 0x3f0   : > { %v1763_v53 = vmax.f32 %v1683_v51, 0.0  ;;  %v1685_v55 = vpop.f32.mrb[59].mxu0  ;;  %v1765_v58 = vmax.f32 %v1736_v54, 0.0  ;;  %v1738_v60 = vpop.f32.mrb[59].mxu1 }
 0x3f1   : > { %v1764_v59 = vmax.f32 %v1685_v55, 0.0  ;;  %v1766_v63 = vmax.f32 %v1738_v60, 0.0 }
 0x3f2   : > { %v1787_v62 = vpack.c.bf16 %v1763_v53, %v1755_v52  ;;  %v1789_v0 = vpack.c.bf16 %v1765_v58, %v1757_v56 }
 0x3f3   : > { %v1788_v1 = vpack.c.bf16 %v1764_v59, %v1756_v57  ;;  %v1790_v2 = vpack.c.bf16 %v1766_v63, %v1758_v61 }
 0x3f5   : > { %v1689_v3 = vpop.f32.mrb[60].mxu0  ;;  %1913 = vmatprep.subr.bf16.mxu0 %v1788_v1  ;;  %v1742_v4 = vpop.f32.mrb[60].mxu1  ;;  %1960 = vmatprep.subr.bf16.mxu1 %v1790_v2 }
 0x3f6   : > { %v1691_v5 = vpop.f32.mrb[61].mxu0  ;;  %1914 = vmatpush1.bf16.msra.mxu0 %v1787_v62  ;;  %v1744_v6 = vpop.f32.mrb[61].mxu1  ;;  %1961 = vmatpush1.bf16.msra.mxu1 %v1789_v0  ;;  %v1771_v8 = vmax.f32 %v1689_v3, 0.0  ;;  %v1773_v12 = vmax.f32 %v1742_v4, 0.0 }
 0x3f7   : > { %v1693_v7 = vpop.f32.mrb[62].mxu0  ;;  %v1746_v10 = vpop.f32.mrb[62].mxu1  ;;  %v1772_v13 = vmax.f32 %v1691_v5, 0.0  ;;  %v1774_v17 = vmax.f32 %v1744_v6, 0.0 }
 0x3f8   : > { %v1779_v9 = vmax.f32 %v1693_v7, 0.0  ;;  %v1695_v11 = vpop.f32.mrb[63].mxu0  ;;  %v1781_v14 = vmax.f32 %v1746_v10, 0.0  ;;  %v1748_v16 = vpop.f32.mrb[63].mxu1 }
 0x3f9   : > { %v1780_v15 = vmax.f32 %v1695_v11, 0.0  ;;  %v1782_v19 = vmax.f32 %v1748_v16, 0.0 }
 0x3fa   : > { %v1795_v18 = vpack.c.bf16 %v1779_v9, %v1771_v8  ;;  %v1797_v20 = vpack.c.bf16 %v1781_v14, %v1773_v12 }
 0x3fb   : > { %v1796_v21 = vpack.c.bf16 %v1780_v15, %v1772_v13  ;;  %v1798_v22 = vpack.c.bf16 %v1782_v19, %v1774_v17 }
 0x3fd   : > { %1915 = vmatprep.subr.bf16.mxu0 %v1796_v21  ;;  %1962 = vmatprep.subr.bf16.mxu1 %v1798_v22 }
 0x3fe   : > { %1916 = vmatpush1.bf16.msra.mxu0 %v1795_v18  ;;  %1963 = vmatpush1.bf16.msra.mxu1 %v1797_v20 }
 0x401   : > { %2334 = vmatmul.mubr.msk.bf16.vlgmr.msra.gmra.mrb[72].mxu0 %vm907_vm1, %v2422_v45  ;;  %2336 = vmatmul.mubr.msk.bf16.vlgmr.msra.gmra.mrb[72].mxu1 %vm907_vm1, %v2422_v45 }
 0x402   : > { %1953 = vmatprep.mubr.bf16.mxu0 %v2496_v40  ;;  %2000 = vmatprep.mubr.bf16.mxu1 %v2496_v40 }
 0x409   : > { %2335 = vmatmul.mubr.msk.bf16.gmra.mrb[76].mxu0 %vm907_vm1, %v2423_v46  ;;  %2337 = vmatmul.mubr.msk.bf16.gmra.mrb[76].mxu1 %vm907_vm1, %v2423_v46 }
 0x4b4   : > { %v1853_v23 = vpop.f32.mrb[64].mxu0  ;;  %v1900_v25 = vpop.f32.mrb[64].mxu1 }
 0x4b5   : > { %v2338_v24 = vmul.f32 -1.442695, %v1853_v23  ;;  %v1855_v26 = vpop.f32.mrb[65].mxu0  ;;  %v2340_v27 = vmul.f32 -1.442695, %v1900_v25  ;;  %v1902_v29 = vpop.f32.mrb[65].mxu1 }
 0x4b6   : > { %v2339_v28 = vmul.f32 -1.442695, %v1855_v26  ;;  %v1857_v30 = vpop.f32.mrb[66].mxu0  ;;  %v2341_v31 = vmul.f32 -1.442695, %v1902_v29  ;;  %v1904_v33 = vpop.f32.mrb[66].mxu1 }
 0x4b7   : > { %2440 = vpow2.f32 %v2338_v24  ;;  %v1858_v34 = vpop.f32.mrb[67].mxu0  ;;  %v1905_v35 = vpop.f32.mrb[67].mxu1 }
 0x4b8   : > { %2442 = vpow2.f32 %v2340_v27 }
 0x4b9   : > { %2444 = vpow2.f32 %v2339_v28 }
 0x4ba   : > { %2446 = vpow2.f32 %v2341_v31 }
 0x4bc   : > { %v1861_v40 = vpop.f32.mrb[68].mxu0  ;;  %v1908_v36 = vpop.f32.mrb[68].mxu1 }
 0x4bd   : > { %v1862_v37 = vpop.f32.mrb[69].mxu0  ;;  %v1909_v32 = vpop.f32.mrb[69].mxu1 }
 0x4be   : > { %v1863_v38 = vpop.f32.mrb[70].mxu0  ;;  %v1910_v39 = vpop.f32.mrb[70].mxu1 }
 0x4bf   : > { %v1864_v41 = vpop.f32.mrb[71].mxu0  ;;  %v1911_v42 = vpop.f32.mrb[71].mxu1 }
 0x4c1   : > { %v2441_v43 = vpop.eup %2440 }
 0x4c2   : > { %v2443_v44 = vpop.eup %2442  ;;  %v2031_v45 = vadd.f32 1.0, %v2441_v43 }
 0x4c3   : > { %v2445_v46 = vpop.eup %2444  ;;  %v2033_v47 = vadd.f32 1.0, %v2443_v44 }
 0x4c4   : > { %v2447_v48 = vpop.eup %2446  ;;  %2448 = vrcp.f32 %v2031_v45  ;;  %v2032_v49 = vadd.f32 1.0, %v2445_v46 }
 0x4c5   : > { %2450 = vrcp.f32 %v2033_v47  ;;  %v2034_v50 = vadd.f32 1.0, %v2447_v48 }
 0x4c6   : > { %2452 = vrcp.f32 %v2032_v49 }
 0x4c7   : > { %2454 = vrcp.f32 %v2034_v50 }
 0x4ce   : > { %v2449_v51 = vpop.eup %2448 }
 0x4cf   : > { %v2451_v52 = vpop.eup %2450 }
 0x4d0   : > { %v2453_v53 = vpop.eup %2452 }
 0x4d1   : > { %v2455_v54 = vpop.eup %2454  ;;  %v2063_v55 = vcombine.low %v2449_v51, %v2453_v53 }
 0x4d2   : > { %v2064_v56 = vcombine.low %v2451_v52, %v2455_v54 }
 0x4d3   : > { %2071 = vst [vmem:[%s2834_s26] sm:$0x77] %v2063_v55 }
 0x4d4   : > { %2072 = vst [vmem:[%s2834_s26 + $0x8] sm:$0x77] %v2064_v56  ;;  %v1947_v57 = vpop.f32.mrb[72].mxu0  ;;  %v1994_v59 = vpop.f32.mrb[72].mxu1 }
 0x4d5   : > { %v2342_v58 = vmul.f32 -1.442695, %v1947_v57  ;;  %v1949_v60 = vpop.f32.mrb[73].mxu0  ;;  %v2344_v61 = vmul.f32 -1.442695, %v1994_v59  ;;  %v1996_v63 = vpop.f32.mrb[73].mxu1 }
 0x4d6   : > { %v2343_v62 = vmul.f32 -1.442695, %v1949_v60  ;;  %v1951_v0 = vpop.f32.mrb[74].mxu0  ;;  %v2345_v1 = vmul.f32 -1.442695, %v1996_v63  ;;  %v1998_v2 = vpop.f32.mrb[74].mxu1 }
 0x4d7   : > { %2456 = vpow2.f32 %v2342_v58  ;;  %v1952_v3 = vpop.f32.mrb[75].mxu0  ;;  %v1999_v4 = vpop.f32.mrb[75].mxu1 }
 0x4d8   : > { %2458 = vpow2.f32 %v2344_v61 }
 0x4d9   : > { %2460 = vpow2.f32 %v2343_v62 }
 0x4da   : > { %2462 = vpow2.f32 %v2345_v1 }
 0x4dc   : > { %v1955_v5 = vpop.f32.mrb[76].mxu0  ;;  %v2002_v6 = vpop.f32.mrb[76].mxu1 }
 0x4dd   : > { %v1956_v7 = vpop.f32.mrb[77].mxu0  ;;  %v2003_v8 = vpop.f32.mrb[77].mxu1 }
 0x4de   : > { %v1957_v9 = vpop.f32.mrb[78].mxu0  ;;  %v2004_v10 = vpop.f32.mrb[78].mxu1 }
 0x4df   : > { %v1958_v11 = vpop.f32.mrb[79].mxu0  ;;  %v2005_v12 = vpop.f32.mrb[79].mxu1 }
 0x4e1   : > { %v2457_v13 = vpop.eup %2456 }
 0x4e2   : > { %v2459_v14 = vpop.eup %2458  ;;  %v2035_v15 = vadd.f32 1.0, %v2457_v13 }
 0x4e3   : > { %v2461_v16 = vpop.eup %2460  ;;  %v2037_v17 = vadd.f32 1.0, %v2459_v14 }
 0x4e4   : > { %v2463_v18 = vpop.eup %2462  ;;  %2464 = vrcp.f32 %v2035_v15  ;;  %v2036_v19 = vadd.f32 1.0, %v2461_v16 }
 0x4e5   : > { %2466 = vrcp.f32 %v2037_v17  ;;  %v2038_v20 = vadd.f32 1.0, %v2463_v18 }
 0x4e6   : > { %2468 = vrcp.f32 %v2036_v19 }
 0x4e7   : > { %2470 = vrcp.f32 %v2038_v20 }
 0x4ee   : > { %v2465_v21 = vpop.eup %2464 }
 0x4ef   : > { %v2467_v22 = vpop.eup %2466 }
 0x4f0   : > { %v2469_v23 = vpop.eup %2468 }
 0x4f1   : > { %v2471_v24 = vpop.eup %2470  ;;  %v2065_v25 = vcombine.low %v2465_v21, %v2469_v23 }
 0x4f2   : > { %v2066_v26 = vcombine.low %v2467_v22, %v2471_v24 }
 0x4f3   : > { %2073 = vst [vmem:[%s2834_s26 + $0x10] sm:$0x77] %v2065_v25 }
 0x4f4   : > { %2074 = vst [vmem:[%s2834_s26 + $0x18] sm:$0x77] %v2066_v26 }
 0x4f5 PF: > { %p10_p9 = scmp.ge.s32.totalorder %s2536_s16, 4   ;;  %s2903_s12 = smov %s2490_s13 }
 0x4f6   : > { %s2904_s13 = smov %s2545_s19  ;;  %s2905_s14 = smov %s2536_s16 }
 0x4f7   :  { %12 = sbr.rel (!%p10_p9) target bundleno = 2 (0x2), region = 91 }

</bundles_post_ra>
